<compile_context>
chip_gen: v6e
topology: v6e:2x2x1
jax: 0.10.0
libtpu: 0.0.40
codegen_flags: <defaults>
</compile_context>

<pallas_src>
import functools

import numpy as np
import jax
import jax.numpy as jnp
from jax import lax
from jax.experimental import pallas as pl
from jax.experimental.pallas import tpu as pltpu

# ---- module-level constants from the original vanilla.py --------------------
K1 = (3, 3)
K2 = (3, 3)
S1 = (2, 2)
S2 = (2, 2)
D1 = 8
D2 = 16
BN_EPS = 1e-5


def conv2d_hout(height, padding, dilation, kernel_size, stride):
    return (height + 2 * padding[0] - dilation[0] * (kernel_size[0] - 1) - 1) // stride[0] + 1


def conv2d_wout(width, padding, dilation, kernel_size, stride):
    return (width + 2 * padding[1] - dilation[1] * (kernel_size[1] - 1) - 1) // stride[1] + 1


def fold_bn(gamma, beta, running_mean, running_var, eps=BN_EPS):
    scale = gamma / jnp.sqrt(running_var + eps)
    bias = beta - running_mean * scale
    return scale, bias


# -----------------------------------------------------------------------------
# Single fused Pallas kernel for the whole encoder forward pass.
# -----------------------------------------------------------------------------
def _encoder_kernel(p1_ref, c_ref, w1bd_ref, w2t_ref, wl1_ref, wl2_ref, bias_ref,
                    out_ref, *, n_conv1, n_conv2, h1, enc_dim):
    f32 = jnp.float32
    bias = bias_ref[...]                                    # [4, BW]

    # ---- conv1 + BN + ReLU (one block-diagonal matmul) ----------------------
    y1 = jnp.maximum(
        jnp.dot(p1_ref[...], w1bd_ref[...], preferred_element_type=f32)
        + bias[0:1, :n_conv1], 0.0)                         # [B, l1h*l1w*D1]

    # ---- conv2 + BN + ReLU (one Toeplitz/block-sparse matmul) ---------------
    y2 = jnp.maximum(
        jnp.dot(y1, w2t_ref[...], preferred_element_type=f32)
        + bias[1:2, :n_conv2], 0.0)                         # [B, l2h*l2w*D2]

    # ---- lh1: Linear(concat(flat_conv, condition)) + BN + ReLU --------------
    wl1 = wl1_ref[...]                                      # [n_conv2+n_cls, h1]
    acc = (jnp.dot(y2, wl1[:n_conv2, :], preferred_element_type=f32)
           + jnp.dot(c_ref[...], wl1[n_conv2:, :], preferred_element_type=f32)
           + bias[2:3, :h1])
    z1 = jnp.maximum(acc, 0.0)                              # [B, h1]

    # ---- final: Linear + BN + Softmax(dim=1) --------------------------------
    logits = (jnp.dot(z1, wl2_ref[...], preferred_element_type=f32)
              + bias[3:4, :enc_dim])
    logits = logits - jnp.max(logits, axis=-1, keepdims=True)
    e = jnp.exp(logits)
    out_ref[...] = (e / jnp.sum(e, axis=-1, keepdims=True)).astype(out_ref.dtype)


# -----------------------------------------------------------------------------
# Parameter construction (deterministic, synthetic).
# -----------------------------------------------------------------------------
def make_params(height, width, n_classes, encoder_dim=7):
    l1h = conv2d_hout(height, (0, 0), (1, 1), K1, S1)
    l1w = conv2d_wout(width, (0, 0), (1, 1), K1, S1)
    l2h = conv2d_hout(l1h, (0, 0), (1, 1), K2, S2)
    l2w = conv2d_wout(l1w, (0, 0), (1, 1), K2, S2)
    final_conv_dim = l2h * l2w * D2 + n_classes
    h1 = max(final_conv_dim // 2, encoder_dim)

    key = jax.random.PRNGKey(0)
    keys = jax.random.split(key, 16)

    def bn(kg, kb, km, kv, n):
        gamma = jax.random.uniform(kg, (n,), jnp.float32, 0.5, 1.5)
        beta = 0.1 * jax.random.normal(kb, (n,), jnp.float32)
        mean = 0.1 * jax.random.normal(km, (n,), jnp.float32)
        var = jax.random.uniform(kv, (n,), jnp.float32, 0.5, 1.5)
        return fold_bn(gamma, beta, mean, var)

    params = {}
    # conv1: Conv2d(1, D1, K1, S1, bias=False) + BN(D1) + ReLU
    params["w1"] = 0.1 * jax.random.normal(keys[0], (D1, 1, K1[0], K1[1]), jnp.float32)
    params["bn1"] = bn(keys[1], keys[2], keys[3], keys[4], D1)
    # conv2: Conv2d(D1, D2, K2, S2, bias=False) + BN(D2) + ReLU
    params["w2"] = 0.1 * jax.random.normal(keys[5], (D2, D1, K2[0], K2[1]), jnp.float32)
    params["bn2"] = bn(keys[6], keys[7], keys[8], keys[9], D2)
    # lh1: Linear(final_conv_dim, h1) + BN(h1) + ReLU
    params["lw1"] = 0.1 * jax.random.normal(keys[10], (h1, final_conv_dim), jnp.float32)
    params["lb1"] = 0.1 * jax.random.normal(keys[11], (h1,), jnp.float32)
    params["bnl1"] = bn(keys[12], keys[13], keys[14], keys[15], h1)
    # final: Linear(h1, encoder_dim) + BN(encoder_dim) + Softmax(dim=1)
    k2 = jax.random.split(jax.random.PRNGKey(1), 6)
    params["lw2"] = 0.1 * jax.random.normal(k2[0], (encoder_dim, h1), jnp.float32)
    params["lb2"] = 0.1 * jax.random.normal(k2[1], (encoder_dim,), jnp.float32)
    params["bnl2"] = bn(k2[2], k2[3], k2[4], k2[5], encoder_dim)

    params["dims"] = dict(l1h=l1h, l1w=l1w, l2h=l2h, l2w=l2w,
                          final_conv_dim=final_conv_dim, h1=h1,
                          encoder_dim=encoder_dim, n_classes=n_classes)
    return params


# -----------------------------------------------------------------------------
# One-time prep: fold eval-mode BN into weights, build block-diagonal conv1
# weight, Toeplitz conv2 weight, permuted lh1 weight, and a packed bias slab.
# -----------------------------------------------------------------------------
def prepare_params(params):
    d = params["dims"]
    l1h, l1w, l2h, l2w = d["l1h"], d["l1w"], d["l2h"], d["l2w"]
    l1hw, l2hw = l1h * l1w, l2h * l2w
    h1 = d["h1"]
    kh1, kw1 = K1
    kh2, kw2 = K2
    sh2, sw2 = S2

    # conv1: block-diagonal [l1hw*kh1*kw1, l1hw*D1]
    s1, b1 = (np.asarray(a) for a in params["bn1"])
    w1 = np.asarray(params["w1"]).reshape(D1, -1).T * s1[None, :]        # [kh1*kw1, D1]
    w1_bd = np.einsum("pq,td->ptqd", np.eye(l1hw, dtype=np.float32),
                      w1.astype(np.float32)).reshape(l1hw * kh1 * kw1, l1hw * D1)
    b1_tiled = np.tile(b1, l1hw).astype(np.float32)                      # [l1hw*D1]

    # conv2: Toeplitz/block-sparse [l1hw*D1, l2hw*D2]
    s2, b2 = (np.asarray(a) for a in params["bn2"])
    w2f = np.asarray(params["w2"]) * s2[:, None, None, None]             # [D2, D1, kh2, kw2]
    w2_toep = np.zeros((l1hw * D1, l2hw * D2), np.float32)
    for ho in range(l2h):
        for wo in range(l2w):
            pos2 = ho * l2w + wo
            for p in range(kh2):
                for q in range(kw2):
                    pos1 = (sh2 * ho + p) * l1w + (sw2 * wo + q)
                    w2_toep[pos1 * D1:(pos1 + 1) * D1,
                            pos2 * D2:(pos2 + 1) * D2] = w2f[:, :, p, q].T
    b2_tiled = np.tile(b2, l2hw).astype(np.float32)                      # [l2hw*D2]

    # lh1: permute NCHW-flatten columns to the kernel's (pos2, d2) order.
    sl1, bl1_ = (np.asarray(a) for a in params["bnl1"])
    lw1t = np.asarray(params["lw1"]).T * sl1[None, :]                    # [final_conv_dim, h1]
    conv_rows = lw1t[:l2hw * D2, :]                                      # torch idx = d2*l2hw + pos2
    wl1conv = conv_rows.reshape(D2, l2hw, h1).transpose(1, 0, 2).reshape(l2hw * D2, h1)
    wl1cls = lw1t[l2hw * D2:, :]                                         # [n_classes, h1]
    wl1_full = np.concatenate([wl1conv, wl1cls], axis=0).astype(np.float32)
    bias_l1 = (np.asarray(params["lb1"]) * sl1 + bl1_).astype(np.float32)

    # final
    sl2, bl2_ = (np.asarray(a) for a in params["bnl2"])
    wl2 = (np.asarray(params["lw2"]).T * sl2[None, :]).astype(np.float32)
    bias_l2 = (np.asarray(params["lb2"]) * sl2 + bl2_).astype(np.float32)

    # packed bias slab: one DMA instead of four.
    bw = max(b1_tiled.size, b2_tiled.size, bias_l1.size, bias_l2.size)
    bias_pack = np.zeros((4, bw), np.float32)
    bias_pack[0, :b1_tiled.size] = b1_tiled
    bias_pack[1, :b2_tiled.size] = b2_tiled
    bias_pack[2, :bias_l1.size] = bias_l1
    bias_pack[3, :bias_l2.size] = bias_l2

    return {
        "w1_bd": jnp.asarray(w1_bd),
        "w2_toep": jnp.asarray(w2_toep),
        "wl1": jnp.asarray(wl1_full),
        "wl2": jnp.asarray(wl2),
        "bias_pack": jnp.asarray(bias_pack),
    }


# -----------------------------------------------------------------------------
# Encoder forward (activation='softmax'), single fused pallas_call under jit.
# -----------------------------------------------------------------------------
@jax.jit
def encoder_forward(prepped, x, c):
    """x: [B, 1, H, W] float32 (NCHW), c: [B, n_classes]."""
    B, _, H, W = x.shape
    kh1, kw1 = K1
    sh1, sw1 = S1
    l1h = (H - kh1) // sh1 + 1
    l1w = (W - kw1) // sw1 + 1

    # conv1 im2col on the raw input (tiny; fused by XLA under jit).
    # Column order = pos1*(kh1*kw1) + tap, matching the block-diagonal weight.
    slabs = [x[:, 0, p:p + sh1 * l1h:sh1, q:q + sw1 * l1w:sw1]
             for p in range(kh1) for q in range(kw1)]
    p1 = jnp.stack(slabs, axis=-1).reshape(B, l1h * l1w * kh1 * kw1).astype(jnp.float32)
    c32 = c.astype(jnp.float32)

    w1_bd = prepped["w1_bd"]
    w2_toep = prepped["w2_toep"]
    wl1 = prepped["wl1"]
    wl2 = prepped["wl2"]
    bias_pack = prepped["bias_pack"]

    n_conv1 = w1_bd.shape[1]
    n_conv2 = w2_toep.shape[1]
    h1 = wl1.shape[1]
    enc_dim = wl2.shape[1]

    kernel = functools.partial(_encoder_kernel, n_conv1=n_conv1, n_conv2=n_conv2,
                               h1=h1, enc_dim=enc_dim)

    def full_spec(shape):
        n = len(shape)
        return pl.BlockSpec(shape, lambda i, n=n: (0,) * n)

    out = pl.pallas_call(
        kernel,
        out_shape=jax.ShapeDtypeStruct((B, enc_dim), jnp.float32),
        grid=(1,),
        in_specs=[
            full_spec(p1.shape),         # conv1 im2col patches [B, l1hw*kh1*kw1]
            full_spec(c32.shape),        # condition            [B, n_classes]
            full_spec(w1_bd.shape),      # block-diag conv1     [l1hw*kh1*kw1, l1hw*D1]
            full_spec(w2_toep.shape),    # Toeplitz conv2       [l1hw*D1, l2hw*D2]
            full_spec(wl1.shape),        # lh1 weight           [l2hw*D2 + n_cls, h1]
            full_spec(wl2.shape),        # final weight         [h1, enc_dim]
            full_spec(bias_pack.shape),  # packed biases        [4, BW]
        ],
        out_specs=full_spec((B, enc_dim)),
        compiler_params=pltpu.CompilerParams(
            dimension_semantics=("arbitrary",)),
    )(p1, c32, w1_bd, w2_toep, wl1, wl2, bias_pack)
    return out


# -----------------------------------------------------------------------------
# Pure-JAX reference (eval-mode BN) for validation.
# -----------------------------------------------------------------------------
def encoder_reference(params, x, c):
    def bn2d(y, bn):
        s, b = bn
        return y * s[None, :, None, None] + b[None, :, None, None]

    def bn1d(y, bn):
        s, b = bn
        return y * s[None, :] + b[None, :]

    y = lax.conv_general_dilated(x, params["w1"], S1, "VALID",
                                 dimension_numbers=("NCHW", "OIHW", "NCHW"))
    y = jax.nn.relu(bn2d(y, params["bn1"]))
    y = lax.conv_general_dilated(y, params["w2"], S2, "VALID",
                                 dimension_numbers=("NCHW", "OIHW", "NCHW"))
    y = jax.nn.relu(bn2d(y, params["bn2"]))
    y = y.reshape(y.shape[0], -1)
    y = jnp.concatenate([y, c], axis=1)
    y = jax.nn.relu(bn1d(y @ params["lw1"].T + params["lb1"], params["bnl1"]))
    y = bn1d(y @ params["lw2"].T + params["lb2"], params["bnl2"])
    return jax.nn.softmax(y, axis=1)


# TODO(synk): BatchNorm is implemented in eval mode (running stats folded into
# per-channel affine); training-mode batch statistics are not computed in-kernel.

if __name__ == "__main__":
    B, H, W, N_CLASSES, ENC_DIM = 2, 16, 16, 4, 7

    params = make_params(H, W, N_CLASSES, ENC_DIM)
    prepped = prepare_params(params)

    key = jax.random.PRNGKey(0)
    kx, kc = jax.random.split(key)
    x = jax.random.normal(kx, (B, 1, H, W), jnp.float32)             # NCHW, 1 channel
    c = jax.nn.one_hot(jax.random.randint(kc, (B,), 0, N_CLASSES), N_CLASSES,
                       dtype=jnp.float32)

    out = encoder_forward(prepped, x, c)
    out = jax.block_until_ready(out)

    assert out.shape == (B, ENC_DIM), out.shape
    # softmax rows sum to 1 (exact division in-kernel)
    assert jnp.allclose(jnp.sum(out, axis=1), 1.0, atol=1e-5), jnp.sum(out, axis=1)
    # match the pure-JAX eval-mode reference
    ref = encoder_reference(params, x, c)
    assert jnp.allclose(out, ref, atol=1e-4, rtol=1e-3), jnp.max(jnp.abs(out - ref))
    print("KERNEL_OK")
</pallas_src>

<mosaic_0001>
module attributes {stable_mosaic.version = 11 : i64} {
  func.func @_encoder_kernel(%arg0: i32, %arg1: memref<2x441xf32, #tpu.memory_space<vmem>>, %arg2: memref<2x4xf32, #tpu.memory_space<vmem>>, %arg3: memref<441x392xf32, #tpu.memory_space<vmem>>, %arg4: memref<392x144xf32, #tpu.memory_space<vmem>>, %arg5: memref<148x74xf32, #tpu.memory_space<vmem>>, %arg6: memref<74x7xf32, #tpu.memory_space<vmem>>, %arg7: memref<4x392xf32, #tpu.memory_space<vmem>>, %arg8: memref<2x7xf32, #tpu.memory_space<vmem>>) attributes {dimension_semantics = [#tpu.dimension_semantics<arbitrary>], iteration_bounds = array<i64: 1>, scalar_prefetch = 0 : i64, scratch_operands = 0 : i64, tpu.core_type = #tpu.core_type<tc>, window_params = [{pipeline_mode = #tpu.pipeline_mode<synchronous>, transform_indices = @transform_0, window_bounds = array<i64: 2, 441>}, {pipeline_mode = #tpu.pipeline_mode<synchronous>, transform_indices = @transform_1, window_bounds = array<i64: 2, 4>}, {pipeline_mode = #tpu.pipeline_mode<synchronous>, transform_indices = @transform_2, window_bounds = array<i64: 441, 392>}, {pipeline_mode = #tpu.pipeline_mode<synchronous>, transform_indices = @transform_3, window_bounds = array<i64: 392, 144>}, {pipeline_mode = #tpu.pipeline_mode<synchronous>, transform_indices = @transform_4, window_bounds = array<i64: 148, 74>}, {pipeline_mode = #tpu.pipeline_mode<synchronous>, transform_indices = @transform_5, window_bounds = array<i64: 74, 7>}, {pipeline_mode = #tpu.pipeline_mode<synchronous>, transform_indices = @transform_6, window_bounds = array<i64: 4, 392>}, {pipeline_mode = #tpu.pipeline_mode<synchronous>, transform_indices = @transform_7, window_bounds = array<i64: 2, 7>}]} {
    %c0 = arith.constant 0 : index
    %c0_0 = arith.constant 0 : index
    %0 = vector.load %arg7[%c0, %c0_0] : memref<4x392xf32, #tpu.memory_space<vmem>>, vector<4x392xf32>
    %c0_1 = arith.constant 0 : index
    %c0_2 = arith.constant 0 : index
    %1 = vector.load %arg1[%c0_1, %c0_2] : memref<2x441xf32, #tpu.memory_space<vmem>>, vector<2x441xf32>
    %c0_3 = arith.constant 0 : index
    %c0_4 = arith.constant 0 : index
    %2 = vector.load %arg3[%c0_3, %c0_4] : memref<441x392xf32, #tpu.memory_space<vmem>>, vector<441x392xf32>
    %cst = arith.constant dense<0.000000e+00> : vector<2x392xf32>
    %3 = tpu.matmul %1, %2, %cst {dimension_numbers = #tpu.dot_dimension_numbers<[1], [0], [0], [1], [0, 0, 1, 1], [], []>} : vector<2x441xf32>, vector<441x392xf32>, vector<2x392xf32> -> vector<2x392xf32>
    %4 = vector.extract_strided_slice %0 {offsets = [0, 0], sizes = [1, 392], strides = [1, 1]} : vector<4x392xf32> to vector<1x392xf32>
    %5 = vector.broadcast %4 : vector<1x392xf32> to vector<2x392xf32>
    %6 = arith.addf %3, %5 : vector<2x392xf32>
    %cst_5 = arith.constant 0.000000e+00 : f32
    %7 = vector.broadcast %cst_5 : f32 to vector<2x392xf32>
    %8 = arith.maximumf %6, %7 : vector<2x392xf32>
    %c0_6 = arith.constant 0 : index
    %c0_7 = arith.constant 0 : index
    %9 = vector.load %arg4[%c0_6, %c0_7] : memref<392x144xf32, #tpu.memory_space<vmem>>, vector<392x144xf32>
    %cst_8 = arith.constant dense<0.000000e+00> : vector<2x144xf32>
    %10 = tpu.matmul %8, %9, %cst_8 {dimension_numbers = #tpu.dot_dimension_numbers<[1], [0], [0], [1], [0, 0, 1, 1], [], []>} : vector<2x392xf32>, vector<392x144xf32>, vector<2x144xf32> -> vector<2x144xf32>
    %11 = vector.extract_strided_slice %0 {offsets = [1, 0], sizes = [1, 144], strides = [1, 1]} : vector<4x392xf32> to vector<1x144xf32>
    %12 = vector.broadcast %11 : vector<1x144xf32> to vector<2x144xf32>
    %13 = arith.addf %10, %12 : vector<2x144xf32>
    %cst_9 = arith.constant 0.000000e+00 : f32
    %14 = vector.broadcast %cst_9 : f32 to vector<2x144xf32>
    %15 = arith.maximumf %13, %14 : vector<2x144xf32>
    %c0_10 = arith.constant 0 : index
    %c0_11 = arith.constant 0 : index
    %16 = vector.load %arg5[%c0_10, %c0_11] : memref<148x74xf32, #tpu.memory_space<vmem>>, vector<148x74xf32>
    %17 = vector.extract_strided_slice %16 {offsets = [0, 0], sizes = [144, 74], strides = [1, 1]} : vector<148x74xf32> to vector<144x74xf32>
    %cst_12 = arith.constant dense<0.000000e+00> : vector<2x74xf32>
    %18 = tpu.matmul %15, %17, %cst_12 {dimension_numbers = #tpu.dot_dimension_numbers<[1], [0], [0], [1], [0, 0, 1, 1], [], []>} : vector<2x144xf32>, vector<144x74xf32>, vector<2x74xf32> -> vector<2x74xf32>
    %c0_13 = arith.constant 0 : index
    %c0_14 = arith.constant 0 : index
    %19 = vector.load %arg2[%c0_13, %c0_14] : memref<2x4xf32, #tpu.memory_space<vmem>>, vector<2x4xf32>
    %20 = vector.extract_strided_slice %16 {offsets = [144, 0], sizes = [4, 74], strides = [1, 1]} : vector<148x74xf32> to vector<4x74xf32>
    %cst_15 = arith.constant dense<0.000000e+00> : vector<2x74xf32>
    %21 = tpu.matmul %19, %20, %cst_15 {dimension_numbers = #tpu.dot_dimension_numbers<[1], [0], [0], [1], [0, 0, 1, 1], [], []>} : vector<2x4xf32>, vector<4x74xf32>, vector<2x74xf32> -> vector<2x74xf32>
    %22 = arith.addf %18, %21 : vector<2x74xf32>
    %23 = vector.extract_strided_slice %0 {offsets = [2, 0], sizes = [1, 74], strides = [1, 1]} : vector<4x392xf32> to vector<1x74xf32>
    %24 = vector.broadcast %23 : vector<1x74xf32> to vector<2x74xf32>
    %25 = arith.addf %22, %24 : vector<2x74xf32>
    %cst_16 = arith.constant 0.000000e+00 : f32
    %26 = vector.broadcast %cst_16 : f32 to vector<2x74xf32>
    %27 = arith.maximumf %25, %26 : vector<2x74xf32>
    %c0_17 = arith.constant 0 : index
    %c0_18 = arith.constant 0 : index
    %28 = vector.load %arg6[%c0_17, %c0_18] : memref<74x7xf32, #tpu.memory_space<vmem>>, vector<74x7xf32>
    %cst_19 = arith.constant dense<0.000000e+00> : vector<2x7xf32>
    %29 = tpu.matmul %27, %28, %cst_19 {dimension_numbers = #tpu.dot_dimension_numbers<[1], [0], [0], [1], [0, 0, 1, 1], [], []>} : vector<2x74xf32>, vector<74x7xf32>, vector<2x7xf32> -> vector<2x7xf32>
    %30 = vector.extract_strided_slice %0 {offsets = [3, 0], sizes = [1, 7], strides = [1, 1]} : vector<4x392xf32> to vector<1x7xf32>
    %31 = vector.broadcast %30 : vector<1x7xf32> to vector<2x7xf32>
    %32 = arith.addf %29, %31 : vector<2x7xf32>
    %cst_20 = arith.constant dense<0xFF800000> : vector<2xf32>
    %33 = vector.multi_reduction <maximumf>, %32, %cst_20 [1] : vector<2x7xf32> to vector<2xf32>
    %34 = vector.shape_cast %33 : vector<2xf32> to vector<2x1xf32>
    %35 = vector.broadcast %34 : vector<2x1xf32> to vector<2x7xf32>
    %36 = arith.subf %32, %35 : vector<2x7xf32>
    %37 = math.exp %36 : vector<2x7xf32>
    %cst_21 = arith.constant dense<0.000000e+00> : vector<2xf32>
    %38 = vector.multi_reduction <add>, %37, %cst_21 [1] : vector<2x7xf32> to vector<2xf32>
    %39 = vector.shape_cast %38 : vector<2xf32> to vector<2x1xf32>
    %40 = vector.broadcast %39 : vector<2x1xf32> to vector<2x7xf32>
    %41 = arith.divf %37, %40 : vector<2x7xf32>
    %c0_22 = arith.constant 0 : index
    %c0_23 = arith.constant 0 : index
    %42 = vector.load %arg8[%c0_22, %c0_23] : memref<2x7xf32, #tpu.memory_space<vmem>>, vector<2x7xf32>
    tpu.vector_store %arg8[%c0_22, %c0_23], %41 {strides = array<i32>} : memref<2x7xf32, #tpu.memory_space<vmem>>, vector<2x7xf32>,
    return
  }
  func.func @transform_0(%arg0: i32) -> (i32, i32) {
    %c0_i32 = arith.constant 0 : i32
    %c0_i32_0 = arith.constant 0 : i32
    %c0_i32_1 = arith.constant 0 : i32
    return %c0_i32, %c0_i32_0 : i32, i32
  }
  func.func @transform_1(%arg0: i32) -> (i32, i32) {
    %c0_i32 = arith.constant 0 : i32
    %c0_i32_0 = arith.constant 0 : i32
    %c0_i32_1 = arith.constant 0 : i32
    return %c0_i32, %c0_i32_0 : i32, i32
  }
  func.func @transform_2(%arg0: i32) -> (i32, i32) {
    %c0_i32 = arith.constant 0 : i32
    %c0_i32_0 = arith.constant 0 : i32
    %c0_i32_1 = arith.constant 0 : i32
    return %c0_i32, %c0_i32_0 : i32, i32
  }
  func.func @transform_3(%arg0: i32) -> (i32, i32) {
    %c0_i32 = arith.constant 0 : i32
    %c0_i32_0 = arith.constant 0 : i32
    %c0_i32_1 = arith.constant 0 : i32
    return %c0_i32, %c0_i32_0 : i32, i32
  }
  func.func @transform_4(%arg0: i32) -> (i32, i32) {
    %c0_i32 = arith.constant 0 : i32
    %c0_i32_0 = arith.constant 0 : i32
    %c0_i32_1 = arith.constant 0 : i32
    return %c0_i32, %c0_i32_0 : i32, i32
  }
  func.func @transform_5(%arg0: i32) -> (i32, i32) {
    %c0_i32 = arith.constant 0 : i32
    %c0_i32_0 = arith.constant 0 : i32
    %c0_i32_1 = arith.constant 0 : i32
    return %c0_i32, %c0_i32_0 : i32, i32
  }
  func.func @transform_6(%arg0: i32) -> (i32, i32) {
    %c0_i32 = arith.constant 0 : i32
    %c0_i32_0 = arith.constant 0 : i32
    %c0_i32_1 = arith.constant 0 : i32
    return %c0_i32, %c0_i32_0 : i32, i32
  }
  func.func @transform_7(%arg0: i32) -> (i32, i32) {
    %c0_i32 = arith.constant 0 : i32
    %c0_i32_0 = arith.constant 0 : i32
    %c0_i32_1 = arith.constant 0 : i32
    return %c0_i32, %c0_i32_0 : i32, i32
  }
}

</mosaic_0001>

<bundles_post_ra>
// kernel: encoder_forward.1
= control target key start
LH: loop header
LB: loop body
LE: loop exit
PB: predicated region body
PF: predicated region fallthrough
CT: control target
= control target key end

     0   :  { %vm316_vm0 = vcmask 1040384   ;;  %vm313_vm1 = vcmask 465920   ;;  %s2460_s0 = inlined_call_operand.vmem [shape: f32[2,441], index: 0, kind: input, shape index: {}]   ;;  %s2461_s1 = inlined_call_operand.vmem [shape: f32[2,4], index: 1, kind: input, shape index: {}]   ;;  %s2462_s2 = inlined_call_operand.vmem [shape: f32[441,392], index: 2, kind: input, shape index: {}]   ;;  %s2463_s3 = inlined_call_operand.vmem [shape: f32[392,144], index: 3, kind: input, shape index: {}]   ;;  %s2464_s4 = inlined_call_operand.vmem [shape: f32[148,74], index: 4, kind: input, shape index: {}]   ;;  %s2465_s5 = inlined_call_operand.vmem [shape: f32[74,7], index: 5, kind: input, shape index: {}]   ;;  %s2466_s6 = inlined_call_operand.vmem [shape: f32[4,392], index: 6, kind: input, shape index: {}]   ;;  %s2467_s7 = inlined_call_operand.hbm [shape: f32[2,7], index: 7, kind: output, shape index: {}]  }
   0x1   :  { %v91_v0 = vld [vmem:[%s2462_s2 + $0x1e8] sm:$0xff]  ;;  %v90_v2 = vld [vmem:[%s2462_s2 + $0x1e0] sm:$0xff] }
   0x2   :  { %v219_v1 = vld [vmem:[%s2462_s2 + $0x5e8] sm:$0xff]  ;;  %329 = vmatprep.subr.mxu0 %v91_v0  ;;  %v218_v3 = vld [vmem:[%s2462_s2 + $0x5e0] sm:$0xff]  ;;  %v256_v0 = vlaneseq }
   0x3   :  { %400 = vmatprep.subr.mxu1 %v219_v1  ;;  %v87_v4 = vld [vmem:[%s2462_s2 + $0x1c8] sm:$0xff]  ;;  %330 = vmatpush1.msra.mxu0 %v90_v2  ;;  %v86_v6 = vld [vmem:[%s2462_s2 + $0x1c0] sm:$0xff]  ;;  %v1262_v1 = vmov 1983009808  }
   0x4   :  { %v215_v5 = vld [vmem:[%s2462_s2 + $0x5c8] sm:$0xff]  ;;  %401 = vmatpush1.msra.mxu1 %v218_v3  ;;  %v214_v7 = vld [vmem:[%s2462_s2 + $0x5c0] sm:$0xff]  ;;  %331 = vmatprep.subr.mxu0 %v87_v4  ;;  %v295_v2 = vunpack.c.l.s4 %v1262_v1 }
   0x5   :  { %v83_v8 = vld [vmem:[%s2462_s2 + $0x1a8] sm:$0xff]  ;;  %402 = vmatprep.subr.mxu1 %v215_v5  ;;  %v82_v10 = vld [vmem:[%s2462_s2 + $0x1a0] sm:$0xff]  ;;  %332 = vmatpush1.msra.mxu0 %v86_v6 }
   0x6   :  { %v211_v9 = vld [vmem:[%s2462_s2 + $0x5a8] sm:$0xff]  ;;  %v210_v11 = vld [vmem:[%s2462_s2 + $0x5a0] sm:$0xff]  ;;  %403 = vmatpush1.msra.mxu1 %v214_v7  ;;  %333 = vmatprep.subr.mxu0 %v83_v8 }
   0x7   :  { %v79_v12 = vld [vmem:[%s2462_s2 + $0x188] sm:$0xff]  ;;  %404 = vmatprep.subr.mxu1 %v211_v9  ;;  %v78_v14 = vld [vmem:[%s2462_s2 + $0x180] sm:$0xff]  ;;  %334 = vmatpush1.msra.mxu0 %v82_v10 }
   0x8   :  { %v207_v13 = vld [vmem:[%s2462_s2 + $0x588] sm:$0xff]  ;;  %v206_v15 = vld [vmem:[%s2462_s2 + $0x580] sm:$0xff]  ;;  %405 = vmatpush1.msra.mxu1 %v210_v11  ;;  %335 = vmatprep.subr.mxu0 %v79_v12  ;;  %v1523_v11 = vshrl.u32 %v256_v0, 7  ;;  %v296_v12 = vunpack.c.0.s8 %v295_v2  ;;  %v72_v2 = vld [vmem:[%s2462_s2 + $0x150] sm:$0xff] }
   0x9   :  { %v75_v16 = vld [vmem:[%s2462_s2 + $0x168] sm:$0xff]  ;;  %406 = vmatprep.subr.mxu1 %v207_v13  ;;  %v74_v18 = vld [vmem:[%s2462_s2 + $0x160] sm:$0xff]  ;;  %336 = vmatpush1.msra.mxu0 %v78_v14 }
   0xa   :  { %v203_v17 = vld [vmem:[%s2462_s2 + $0x568] sm:$0xff]  ;;  %v202_v19 = vld [vmem:[%s2462_s2 + $0x560] sm:$0xff]  ;;  %407 = vmatpush1.msra.mxu1 %v206_v15  ;;  %337 = vmatprep.subr.mxu0 %v75_v16 }
   0xb   :  { %v71_v20 = vld [vmem:[%s2462_s2 + $0x148] sm:$0xff]  ;;  %408 = vmatprep.subr.mxu1 %v203_v17  ;;  %v70_v22 = vld [vmem:[%s2462_s2 + $0x140] sm:$0xff]  ;;  %338 = vmatpush1.msra.mxu0 %v74_v18 }
   0xc   :  { %v199_v21 = vld [vmem:[%s2462_s2 + $0x548] sm:$0xff]  ;;  %v198_v23 = vld [vmem:[%s2462_s2 + $0x540] sm:$0xff]  ;;  %409 = vmatpush1.msra.mxu1 %v202_v19  ;;  %339 = vmatprep.subr.mxu0 %v71_v20 }
   0xd   :  { %v67_v24 = vld [vmem:[%s2462_s2 + $0x128] sm:$0xff]  ;;  %410 = vmatprep.subr.mxu1 %v199_v21  ;;  %v66_v26 = vld [vmem:[%s2462_s2 + $0x120] sm:$0xff]  ;;  %340 = vmatpush1.msra.mxu0 %v70_v22 }
   0xe   :  { %v195_v25 = vld [vmem:[%s2462_s2 + $0x528] sm:$0xff]  ;;  %v194_v27 = vld [vmem:[%s2462_s2 + $0x520] sm:$0xff]  ;;  %411 = vmatpush1.msra.mxu1 %v198_v23  ;;  %341 = vmatprep.subr.mxu0 %v67_v24  ;;  %v1558_v23 = vsub.s32 %v296_v12, %v1523_v11  ;;  %v64_v12 = vld [vmem:[%s2462_s2 + $0x110] sm:$0xff] }
   0xf   :  { %v63_v28 = vld [vmem:[%s2462_s2 + $0x108] sm:$0xff]  ;;  %412 = vmatprep.subr.mxu1 %v195_v25  ;;  %v62_v30 = vld [vmem:[%s2462_s2 + $0x100] sm:$0xff]  ;;  %342 = vmatpush1.msra.mxu0 %v66_v26 }
  0x10   :  { %v191_v29 = vld [vmem:[%s2462_s2 + $0x508] sm:$0xff]  ;;  %v190_v31 = vld [vmem:[%s2462_s2 + $0x500] sm:$0xff]  ;;  %413 = vmatpush1.msra.mxu1 %v194_v27  ;;  %343 = vmatprep.subr.mxu0 %v63_v28 }
  0x11   :  { %v59_v32 = vld [vmem:[%s2462_s2 + $0xe8] sm:$0xff]  ;;  %414 = vmatprep.subr.mxu1 %v191_v29  ;;  %v58_v34 = vld [vmem:[%s2462_s2 + $0xe0] sm:$0xff]  ;;  %344 = vmatpush1.msra.mxu0 %v62_v30 }
  0x12   :  { %v187_v33 = vld [vmem:[%s2462_s2 + $0x4e8] sm:$0xff]  ;;  %v186_v35 = vld [vmem:[%s2462_s2 + $0x4e0] sm:$0xff]  ;;  %415 = vmatpush1.msra.mxu1 %v190_v31  ;;  %345 = vmatprep.subr.mxu0 %v59_v32 }
  0x13   :  { %v55_v36 = vld [vmem:[%s2462_s2 + $0xc8] sm:$0xff]  ;;  %416 = vmatprep.subr.mxu1 %v187_v33  ;;  %v54_v38 = vld [vmem:[%s2462_s2 + $0xc0] sm:$0xff]  ;;  %346 = vmatpush1.msra.mxu0 %v58_v34 }
  0x14   :  { %v183_v37 = vld [vmem:[%s2462_s2 + $0x4c8] sm:$0xff]  ;;  %v182_v39 = vld [vmem:[%s2462_s2 + $0x4c0] sm:$0xff]  ;;  %417 = vmatpush1.msra.mxu1 %v186_v35  ;;  %347 = vmatprep.subr.mxu0 %v55_v36 }
  0x15   :  { %v51_v40 = vld [vmem:[%s2462_s2 + $0xa8] sm:$0xff]  ;;  %418 = vmatprep.subr.mxu1 %v183_v37  ;;  %v50_v42 = vld [vmem:[%s2462_s2 + $0xa0] sm:$0xff]  ;;  %348 = vmatpush1.msra.mxu0 %v54_v38 }
  0x16   :  { %v179_v41 = vld [vmem:[%s2462_s2 + $0x4a8] sm:$0xff]  ;;  %v178_v43 = vld [vmem:[%s2462_s2 + $0x4a0] sm:$0xff]  ;;  %419 = vmatpush1.msra.mxu1 %v182_v39  ;;  %349 = vmatprep.subr.mxu0 %v51_v40 }
  0x17   :  { %v47_v44 = vld [vmem:[%s2462_s2 + $0x88] sm:$0xff]  ;;  %420 = vmatprep.subr.mxu1 %v179_v41  ;;  %v46_v46 = vld [vmem:[%s2462_s2 + $0x80] sm:$0xff]  ;;  %350 = vmatpush1.msra.mxu0 %v50_v42 }
  0x18   :  { %v175_v45 = vld [vmem:[%s2462_s2 + $0x488] sm:$0xff]  ;;  %v174_v47 = vld [vmem:[%s2462_s2 + $0x480] sm:$0xff]  ;;  %421 = vmatpush1.msra.mxu1 %v178_v43  ;;  %351 = vmatprep.subr.mxu0 %v47_v44  ;;  %v93_v43 = vld [vmem:[%s2462_s2 + $0x1f8] sm:$0xff] }
  0x19   :  { %v43_v48 = vld [vmem:[%s2462_s2 + $0x68] sm:$0xff]  ;;  %422 = vmatprep.subr.mxu1 %v175_v45  ;;  %v42_v50 = vld [vmem:[%s2462_s2 + $0x60] sm:$0xff]  ;;  %352 = vmatpush1.msra.mxu0 %v46_v46  ;;  %v92_v45 = vld [vmem:[%s2462_s2 + $0x1f0] sm:$0xff] }
  0x1a   :  { %v171_v49 = vld [vmem:[%s2462_s2 + $0x468] sm:$0xff]  ;;  %v170_v51 = vld [vmem:[%s2462_s2 + $0x460] sm:$0xff]  ;;  %423 = vmatpush1.msra.mxu1 %v174_v47  ;;  %353 = vmatprep.subr.mxu0 %v43_v48  ;;  %v89_v47 = vld [vmem:[%s2462_s2 + $0x1d8] sm:$0xff] }
  0x1b   :  { %v39_v52 = vld [vmem:[%s2462_s2 + $0x48] sm:$0xff]  ;;  %424 = vmatprep.subr.mxu1 %v171_v49  ;;  %v38_v54 = vld [vmem:[%s2462_s2 + $0x40] sm:$0xff]  ;;  %354 = vmatpush1.msra.mxu0 %v42_v50  ;;  %v88_v49 = vld [vmem:[%s2462_s2 + $0x1d0] sm:$0xff] }
  0x1c   :  { %v167_v53 = vld [vmem:[%s2462_s2 + $0x448] sm:$0xff]  ;;  %v166_v55 = vld [vmem:[%s2462_s2 + $0x440] sm:$0xff]  ;;  %425 = vmatpush1.msra.mxu1 %v170_v51  ;;  %355 = vmatprep.subr.mxu0 %v39_v52  ;;  %v85_v51 = vld [vmem:[%s2462_s2 + $0x1b8] sm:$0xff] }
  0x1d   :  { %v35_v56 = vld [vmem:[%s2462_s2 + $0x28] sm:$0xff]  ;;  %426 = vmatprep.subr.mxu1 %v167_v53  ;;  %v34_v58 = vld [vmem:[%s2462_s2 + $0x20] sm:$0xff]  ;;  %356 = vmatpush1.msra.mxu0 %v38_v54  ;;  %v84_v53 = vld [vmem:[%s2462_s2 + $0x1b0] sm:$0xff] }
  0x1e   :  { %v163_v57 = vld [vmem:[%s2462_s2 + $0x428] sm:$0xff]  ;;  %v162_v59 = vld [vmem:[%s2462_s2 + $0x420] sm:$0xff]  ;;  %427 = vmatpush1.msra.mxu1 %v166_v55  ;;  %357 = vmatprep.subr.mxu0 %v35_v56  ;;  %v81_v55 = vld [vmem:[%s2462_s2 + $0x198] sm:$0xff] }
  0x1f   :  { %v31_v60 = vld [vmem:[%s2462_s2 + $0x8] sm:$0xff]  ;;  %428 = vmatprep.subr.mxu1 %v163_v57  ;;  %v30_v62 = vld [vmem:[%s2462_s2] sm:$0xff]  ;;  %358 = vmatpush1.msra.mxu0 %v34_v58  ;;  %v80_v57 = vld [vmem:[%s2462_s2 + $0x190] sm:$0xff] }
  0x20   :  { %v159_v61 = vld [vmem:[%s2462_s2 + $0x408] sm:$0xff]  ;;  %v158_v63 = vld [vmem:[%s2462_s2 + $0x400] sm:$0xff]  ;;  %429 = vmatpush1.msra.mxu1 %v162_v59  ;;  %359 = vmatprep.subr.mxu0 %v31_v60  ;;  %v77_v59 = vld [vmem:[%s2462_s2 + $0x178] sm:$0xff] }
  0x21   :  { %v155_v3 = vld [vmem:[%s2462_s2 + $0x3e8] sm:$0xff]  ;;  %430 = vmatprep.subr.mxu1 %v159_v61  ;;  %v154_v5 = vld [vmem:[%s2462_s2 + $0x3e0] sm:$0xff]  ;;  %360 = vmatpush1.msra.mxu0 %v30_v62  ;;  %v76_v61 = vld [vmem:[%s2462_s2 + $0x170] sm:$0xff] }
  0x22   :  { %v251_v4 = vld [vmem:[%s2462_s2 + $0x6e8] sm:$0x1]  ;;  %v250_v6 = vld [vmem:[%s2462_s2 + $0x6e0] sm:$0x1]  ;;  %431 = vmatpush1.msra.mxu1 %v158_v63  ;;  %361 = vmatprep.subr.mxu0 %v155_v3  ;;  %v73_v63 = vld [vmem:[%s2462_s2 + $0x158] sm:$0xff] }
  0x23   :  { %v151_v7 = vld [vmem:[%s2462_s2 + $0x3c8] sm:$0xff]  ;;  %1178 = vmatprep.subr.msk.mxu1 %vm316_vm0, %v251_v4  ;;  %v150_v9 = vld [vmem:[%s2462_s2 + $0x3c0] sm:$0xff]  ;;  %362 = vmatpush2.msra.mxu0 %v154_v5  ;;  %v69_v4 = vld [vmem:[%s2462_s2 + $0x138] sm:$0xff] }
  0x24   :  { %v247_v8 = vld [vmem:[%s2462_s2 + $0x6c8] sm:$0xff]  ;;  %v246_v10 = vld [vmem:[%s2462_s2 + $0x6c0] sm:$0xff]  ;;  %1179 = vmatpush2.msk.msra.mxu1 %vm316_vm0, %v250_v6  ;;  %363 = vmatprep.subr.mxu0 %v151_v7  ;;  %v68_v6 = vld [vmem:[%s2462_s2 + $0x130] sm:$0xff] }
  0x25   :  { %v147_v13 = vld [vmem:[%s2462_s2 + $0x3a8] sm:$0xff]  ;;  %v1535_v15 = vld [vmem:[%s2460_s0] sm:$0xff]  ;;  %450 = vmatprep.subr.mxu1 %v247_v8  ;;  %364 = vmatpush2.msra.mxu0 %v150_v9  ;;  %v65_v8 = vld [vmem:[%s2462_s2 + $0x118] sm:$0xff] }
  0x26   :  { %v243_v14 = vld [vmem:[%s2462_s2 + $0x6a8] sm:$0xff]  ;;  %v146_v16 = vld [vmem:[%s2462_s2 + $0x3a0] sm:$0xff]  ;;  %451 = vmatpush2.msra.mxu1 %v246_v10  ;;  %365 = vmatprep.subr.mxu0 %v147_v13  ;;  %v293_v22 = vcombine.high %v1535_v15, %v1535_v15  ;;  %v1686_v0 = vrot.slane %v1535_v15, %v1558_v23  ;;  %v61_v13 = vld [vmem:[%s2462_s2 + $0xf8] sm:$0xff] }
  0x27   :  { %v242_v17 = vld [vmem:[%s2462_s2 + $0x6a0] sm:$0xff]  ;;  %v143_v18 = vld [vmem:[%s2462_s2 + $0x388] sm:$0xff]  ;;  %452 = vmatprep.subr.mxu1 %v243_v14  ;;  %366 = vmatpush2.msra.mxu0 %v146_v16  ;;  %v221_v14 = vld [vmem:[%s2462_s2 + $0x5f8] sm:$0xff] }
  0x28   :  { %v239_v19 = vld [vmem:[%s2462_s2 + $0x688] sm:$0xff]  ;;  %v142_v20 = vld [vmem:[%s2462_s2 + $0x380] sm:$0xff]  ;;  %453 = vmatpush2.msra.mxu1 %v242_v17  ;;  %367 = vmatprep.subr.mxu0 %v143_v18  ;;  %v1585_v32 = vrot.slane %v293_v22, %v1558_v23  ;;  %v1714_v9 = vcombine.high %v1686_v0, %v1686_v0  ;;  %v60_v15 = vld [vmem:[%s2462_s2 + $0xf0] sm:$0xff] }
  0x29   :  { %v238_v21 = vld [vmem:[%s2462_s2 + $0x680] sm:$0xff]  ;;  %v139_v24 = vld [vmem:[%s2462_s2 + $0x368] sm:$0xff]  ;;  %454 = vmatprep.subr.mxu1 %v239_v19  ;;  %368 = vmatpush2.msra.mxu0 %v142_v20  ;;  %v220_v16 = vld [vmem:[%s2462_s2 + $0x5f0] sm:$0xff] }
  0x2a   :  { %v235_v25 = vld [vmem:[%s2462_s2 + $0x668] sm:$0xff]  ;;  %v138_v26 = vld [vmem:[%s2462_s2 + $0x360] sm:$0xff]  ;;  %455 = vmatpush2.msra.mxu1 %v238_v21  ;;  %369 = vmatprep.subr.mxu0 %v139_v24  ;;  %v1613_v41 = vcombine.high %v1585_v32, %v1585_v32  ;;  %v57_v17 = vld [vmem:[%s2462_s2 + $0xd8] sm:$0xff] }
  0x2b   :  { %v234_v27 = vld [vmem:[%s2462_s2 + $0x660] sm:$0xff]  ;;  %v135_v28 = vld [vmem:[%s2462_s2 + $0x348] sm:$0xff]  ;;  %456 = vmatprep.subr.mxu1 %v235_v25  ;;  %370 = vmatpush2.msra.mxu0 %v138_v26  ;;  %v217_v18 = vld [vmem:[%s2462_s2 + $0x5d8] sm:$0xff] }
  0x2c   :  { %v231_v29 = vld [vmem:[%s2462_s2 + $0x648] sm:$0xff]  ;;  %v134_v30 = vld [vmem:[%s2462_s2 + $0x340] sm:$0xff]  ;;  %457 = vmatpush2.msra.mxu1 %v234_v27  ;;  %371 = vmatprep.subr.mxu0 %v135_v28  ;;  %v56_v19 = vld [vmem:[%s2462_s2 + $0xd0] sm:$0xff] }
  0x2d   :  { %v230_v31 = vld [vmem:[%s2462_s2 + $0x640] sm:$0xff]  ;;  %v131_v33 = vld [vmem:[%s2462_s2 + $0x328] sm:$0xff]  ;;  %458 = vmatprep.subr.mxu1 %v231_v29  ;;  %372 = vmatpush2.msra.mxu0 %v134_v30  ;;  %v216_v20 = vld [vmem:[%s2462_s2 + $0x5d0] sm:$0xff] }
  0x2e   :  { %v227_v34 = vld [vmem:[%s2462_s2 + $0x628] sm:$0xff]  ;;  %v130_v35 = vld [vmem:[%s2462_s2 + $0x320] sm:$0xff]  ;;  %459 = vmatpush2.msra.mxu1 %v230_v31  ;;  %373 = vmatprep.subr.mxu0 %v131_v33  ;;  %v53_v21 = vld [vmem:[%s2462_s2 + $0xb8] sm:$0xff] }
  0x2f   :  { %v226_v36 = vld [vmem:[%s2462_s2 + $0x620] sm:$0xff]  ;;  %v127_v37 = vld [vmem:[%s2462_s2 + $0x308] sm:$0xff]  ;;  %460 = vmatprep.subr.mxu1 %v227_v34  ;;  %374 = vmatpush2.msra.mxu0 %v130_v35  ;;  %v213_v22 = vld [vmem:[%s2462_s2 + $0x5b8] sm:$0xff] }
  0x30   :  { %v223_v38 = vld [vmem:[%s2462_s2 + $0x608] sm:$0xff]  ;;  %v126_v39 = vld [vmem:[%s2462_s2 + $0x300] sm:$0xff]  ;;  %461 = vmatpush2.msra.mxu1 %v226_v36  ;;  %375 = vmatprep.subr.mxu0 %v127_v37  ;;  %v52_v23 = vld [vmem:[%s2462_s2 + $0xb0] sm:$0xff] }
  0x31   :  { %v222_v40 = vld [vmem:[%s2462_s2 + $0x600] sm:$0xff]  ;;  %v123_v42 = vld [vmem:[%s2462_s2 + $0x2e8] sm:$0xff]  ;;  %462 = vmatprep.subr.mxu1 %v223_v38  ;;  %376 = vmatpush2.msra.mxu0 %v126_v39  ;;  %v212_v24 = vld [vmem:[%s2462_s2 + $0x5b0] sm:$0xff] }
  0x32   :  { %463 = vmatpush2.msra.mxu1 %v222_v40  ;;  %v122_v44 = vld [vmem:[%s2462_s2 + $0x2e0] sm:$0xff]  ;;  %1180 = vmatprep.mubr.msk.f32.mxu1 %vm313_vm1, %v1613_v41  ;;  %v119_v46 = vld [vmem:[%s2462_s2 + $0x2c8] sm:$0xff]  ;;  %v49_v25 = vld [vmem:[%s2462_s2 + $0x98] sm:$0xff] }
  0x33   :  { %377 = vmatprep.subr.mxu0 %v123_v42  ;;  %465 = vmatmul.mubr.f32.vlgmr.msra.gmra.mxu1 %v1585_v32  ;;  %v118_v48 = vld [vmem:[%s2462_s2 + $0x2c0] sm:$0xff]  ;;  %v115_v50 = vld [vmem:[%s2462_s2 + $0x2a8] sm:$0xff]  ;;  %v209_v26 = vld [vmem:[%s2462_s2 + $0x598] sm:$0xff] }
  0x34   :  { %471 = vmatprep.subr.mxu1 %v93_v43  ;;  %378 = vmatpush2.msra.mxu0 %v122_v44  ;;  %v114_v52 = vld [vmem:[%s2462_s2 + $0x2a0] sm:$0xff]  ;;  %v111_v54 = vld [vmem:[%s2462_s2 + $0x288] sm:$0xff]  ;;  %v48_v27 = vld [vmem:[%s2462_s2 + $0x90] sm:$0xff] }
  0x35   :  { %472 = vmatpush1.msra.mxu1 %v92_v45  ;;  %379 = vmatprep.subr.mxu0 %v119_v46  ;;  %v110_v56 = vld [vmem:[%s2462_s2 + $0x280] sm:$0xff]  ;;  %v107_v58 = vld [vmem:[%s2462_s2 + $0x268] sm:$0xff]  ;;  %v208_v28 = vld [vmem:[%s2462_s2 + $0x590] sm:$0xff] }
  0x36   :  { %473 = vmatprep.subr.mxu1 %v89_v47  ;;  %380 = vmatpush2.msra.mxu0 %v118_v48  ;;  %v106_v60 = vld [vmem:[%s2462_s2 + $0x260] sm:$0xff]  ;;  %v103_v62 = vld [vmem:[%s2462_s2 + $0x248] sm:$0xff]  ;;  %v45_v29 = vld [vmem:[%s2462_s2 + $0x78] sm:$0xff] }
  0x37   :  { %474 = vmatpush1.msra.mxu1 %v88_v49  ;;  %381 = vmatprep.subr.mxu0 %v115_v50  ;;  %v102_v1 = vld [vmem:[%s2462_s2 + $0x240] sm:$0xff]  ;;  %v99_v3 = vld [vmem:[%s2462_s2 + $0x228] sm:$0xff]  ;;  %v205_v30 = vld [vmem:[%s2462_s2 + $0x578] sm:$0xff] }
  0x38   :  { %475 = vmatprep.subr.mxu1 %v85_v51  ;;  %382 = vmatpush2.msra.mxu0 %v114_v52  ;;  %v98_v5 = vld [vmem:[%s2462_s2 + $0x220] sm:$0xff]  ;;  %v95_v7 = vld [vmem:[%s2462_s2 + $0x208] sm:$0xff]  ;;  %v44_v31 = vld [vmem:[%s2462_s2 + $0x70] sm:$0xff] }
  0x39   :  { %476 = vmatpush1.msra.mxu1 %v84_v53  ;;  %383 = vmatprep.subr.mxu0 %v111_v54  ;;  %v94_v10 = vld [vmem:[%s2462_s2 + $0x200] sm:$0xff]  ;;  %v204_v33 = vld [vmem:[%s2462_s2 + $0x570] sm:$0xff]  ;;  %v41_v34 = vld [vmem:[%s2462_s2 + $0x58] sm:$0xff] }
  0x3a   :  { %477 = vmatprep.subr.mxu1 %v81_v55  ;;  %384 = vmatpush2.msra.mxu0 %v110_v56  ;;  %v201_v35 = vld [vmem:[%s2462_s2 + $0x558] sm:$0xff]  ;;  %v40_v36 = vld [vmem:[%s2462_s2 + $0x50] sm:$0xff] }
  0x3b   :  { %478 = vmatpush1.msra.mxu1 %v80_v57  ;;  %385 = vmatprep.subr.mxu0 %v107_v58  ;;  %v200_v37 = vld [vmem:[%s2462_s2 + $0x550] sm:$0xff]  ;;  %v37_v38 = vld [vmem:[%s2462_s2 + $0x38] sm:$0xff] }
  0x3c   :  { %479 = vmatprep.subr.mxu1 %v77_v59  ;;  %386 = vmatpush2.msra.mxu0 %v106_v60  ;;  %v197_v39 = vld [vmem:[%s2462_s2 + $0x538] sm:$0xff]  ;;  %v36_v40 = vld [vmem:[%s2462_s2 + $0x30] sm:$0xff] }
  0x3d   :  { %480 = vmatpush1.msra.mxu1 %v76_v61  ;;  %387 = vmatprep.subr.mxu0 %v103_v62  ;;  %v196_v42 = vld [vmem:[%s2462_s2 + $0x530] sm:$0xff]  ;;  %v33_v43 = vld [vmem:[%s2462_s2 + $0x18] sm:$0xff] }
  0x3e   :  { %481 = vmatprep.subr.mxu1 %v73_v63  ;;  %388 = vmatpush2.msra.mxu0 %v102_v1  ;;  %v193_v44 = vld [vmem:[%s2462_s2 + $0x518] sm:$0xff]  ;;  %v32_v45 = vld [vmem:[%s2462_s2 + $0x10] sm:$0xff] }
  0x3f   :  { %482 = vmatpush1.msra.mxu1 %v72_v2  ;;  %389 = vmatprep.subr.mxu0 %v99_v3  ;;  %v192_v46 = vld [vmem:[%s2462_s2 + $0x510] sm:$0xff]  ;;  %v157_v47 = vld [vmem:[%s2462_s2 + $0x3f8] sm:$0xff] }
  0x40   :  { %483 = vmatprep.subr.mxu1 %v69_v4  ;;  %390 = vmatpush2.msra.mxu0 %v98_v5  ;;  %v189_v48 = vld [vmem:[%s2462_s2 + $0x4f8] sm:$0xff]  ;;  %v156_v49 = vld [vmem:[%s2462_s2 + $0x3f0] sm:$0xff] }
  0x41   :  { %484 = vmatpush1.msra.mxu1 %v68_v6  ;;  %391 = vmatprep.subr.mxu0 %v95_v7  ;;  %v188_v50 = vld [vmem:[%s2462_s2 + $0x4f0] sm:$0xff]  ;;  %v153_v51 = vld [vmem:[%s2462_s2 + $0x3d8] sm:$0xff] }
  0x42   :  { %485 = vmatprep.subr.mxu1 %v65_v8  ;;  %392 = vmatpush2.msra.mxu0 %v94_v10  ;;  %v185_v52 = vld [vmem:[%s2462_s2 + $0x4d8] sm:$0xff]  ;;  %v152_v53 = vld [vmem:[%s2462_s2 + $0x3d0] sm:$0xff] }
  0x43   :  { %393 = vmatprep.mubr.f32.mxu0 %v1714_v9  ;;  %486 = vmatpush1.msra.mxu1 %v64_v12  ;;  %v184_v54 = vld [vmem:[%s2462_s2 + $0x4d0] sm:$0xff]  ;;  %v149_v55 = vld [vmem:[%s2462_s2 + $0x3b8] sm:$0xff] }
  0x44   :  { %394 = vmatmul.mubr.f32.vlgmr.msra.gmra.mxu0 %v1686_v0  ;;  %487 = vmatprep.subr.mxu1 %v61_v13  ;;  %v181_v56 = vld [vmem:[%s2462_s2 + $0x4b8] sm:$0xff]  ;;  %v148_v57 = vld [vmem:[%s2462_s2 + $0x3b0] sm:$0xff] }
  0x45   :  { %542 = vmatprep.subr.mxu0 %v221_v14  ;;  %488 = vmatpush1.msra.mxu1 %v60_v15  ;;  %v180_v58 = vld [vmem:[%s2462_s2 + $0x4b0] sm:$0xff]  ;;  %v145_v59 = vld [vmem:[%s2462_s2 + $0x398] sm:$0xff] }
  0x46   :  { %543 = vmatpush1.msra.mxu0 %v220_v16  ;;  %489 = vmatprep.subr.mxu1 %v57_v17  ;;  %v177_v60 = vld [vmem:[%s2462_s2 + $0x498] sm:$0xff]  ;;  %v144_v61 = vld [vmem:[%s2462_s2 + $0x390] sm:$0xff] }
  0x47   :  { %544 = vmatprep.subr.mxu0 %v217_v18  ;;  %490 = vmatpush1.msra.mxu1 %v56_v19  ;;  %v176_v62 = vld [vmem:[%s2462_s2 + $0x490] sm:$0xff] }
  0x48   :  { %545 = vmatpush1.msra.mxu0 %v216_v20  ;;  %491 = vmatprep.subr.mxu1 %v53_v21 }
  0x49   :  { %546 = vmatprep.subr.mxu0 %v213_v22  ;;  %492 = vmatpush1.msra.mxu1 %v52_v23 }
  0x4a   :  { %547 = vmatpush1.msra.mxu0 %v212_v24  ;;  %493 = vmatprep.subr.mxu1 %v49_v25 }
  0x4b   :  { %548 = vmatprep.subr.mxu0 %v209_v26  ;;  %494 = vmatpush1.msra.mxu1 %v48_v27 }
  0x4c   :  { %549 = vmatpush1.msra.mxu0 %v208_v28  ;;  %495 = vmatprep.subr.mxu1 %v45_v29 }
  0x4d   :  { %550 = vmatprep.subr.mxu0 %v205_v30  ;;  %496 = vmatpush1.msra.mxu1 %v44_v31 }
  0x4e   :  { %551 = vmatpush1.msra.mxu0 %v204_v33  ;;  %497 = vmatprep.subr.mxu1 %v41_v34 }
  0x4f   :  { %552 = vmatprep.subr.mxu0 %v201_v35  ;;  %498 = vmatpush1.msra.mxu1 %v40_v36 }
  0x50   :  { %553 = vmatpush1.msra.mxu0 %v200_v37  ;;  %499 = vmatprep.subr.mxu1 %v37_v38 }
  0x51   :  { %554 = vmatprep.subr.mxu0 %v197_v39  ;;  %500 = vmatpush1.msra.mxu1 %v36_v40 }
  0x52   :  { %555 = vmatpush1.msra.mxu0 %v196_v42  ;;  %501 = vmatprep.subr.mxu1 %v33_v43 }
  0x53   :  { %556 = vmatprep.subr.mxu0 %v193_v44  ;;  %502 = vmatpush1.msra.mxu1 %v32_v45 }
  0x54   :  { %557 = vmatpush1.msra.mxu0 %v192_v46  ;;  %503 = vmatprep.subr.mxu1 %v157_v47 }
  0x55   :  { %558 = vmatprep.subr.mxu0 %v189_v48  ;;  %504 = vmatpush2.msra.mxu1 %v156_v49 }
  0x56   :  { %559 = vmatpush1.msra.mxu0 %v188_v50  ;;  %505 = vmatprep.subr.mxu1 %v153_v51 }
  0x57   :  { %560 = vmatprep.subr.mxu0 %v185_v52  ;;  %506 = vmatpush2.msra.mxu1 %v152_v53 }
  0x58   :  { %561 = vmatpush1.msra.mxu0 %v184_v54  ;;  %507 = vmatprep.subr.mxu1 %v149_v55 }
  0x59   :  { %562 = vmatprep.subr.mxu0 %v181_v56 }
  0x5a   :  { %12 = vsyncpa [#allocation3], 0  ;;  %508 = vmatpush2.msra.mxu1 %v148_v57  ;;  %563 = vmatpush1.msra.mxu0 %v180_v58  ;;  %v141_v63 = vld [vmem:[%s2462_s2 + $0x378] sm:$0xff]  ;;  %v140_v2 = vld [vmem:[%s2462_s2 + $0x370] sm:$0xff]  ;;  %vm733_vm2 = vcmask 64512   ;;  %vm905_vm3 = vcmask 1043456  }
  0x5b   :  { %v173_v1 = vld [vmem:[%s2462_s2 + $0x478] sm:$0xff]  ;;  %509 = vmatprep.subr.mxu1 %v145_v59  ;;  %564 = vmatprep.subr.mxu0 %v177_v60  ;;  %v172_v3 = vld [vmem:[%s2462_s2 + $0x470] sm:$0xff]  ;;  %v645_v54 = vld [vmem:[%s2463_s3 + $0xe0] sm:$0xff]  ;;  %vm1264_vm4 = vmmov 0   ;;  %vm901_vm5 = vcmask 31744   ;;  %vm1077_vm6 = vcmask 1041408  }
  0x5c   :  { %510 = vmatpush2.msra.mxu1 %v144_v61  ;;  %565 = vmatpush1.msra.mxu0 %v176_v62  ;;  %v137_v4 = vld [vmem:[%s2462_s2 + $0x358] sm:$0xff]  ;;  %v136_v6 = vld [vmem:[%s2462_s2 + $0x350] sm:$0xff]  ;;  %v641_v55 = vld [vmem:[%s2463_s3 + $0xc0] sm:$0xff]  ;;  %vm979_vm7 = vcmask 130048   ;;  %vm1073_vm8 = vcmask 605184   ;;  %vm1151_vm9 = vcmask 50176  }
  0x5d   :  { %v169_v5 = vld [vmem:[%s2462_s2 + $0x458] sm:$0xff]  ;;  %511 = vmatprep.subr.mxu1 %v141_v63  ;;  %566 = vmatprep.subr.mxu0 %v173_v1  ;;  %v168_v7 = vld [vmem:[%s2462_s2 + $0x450] sm:$0xff]  ;;  %v638_v58 = vld [vmem:[%s2463_s3 + $0xa8] sm:$0xff] }
  0x5e   :  { %512 = vmatpush2.msra.mxu1 %v140_v2  ;;  %567 = vmatpush1.msra.mxu0 %v172_v3  ;;  %v133_v8 = vld [vmem:[%s2462_s2 + $0x338] sm:$0xff]  ;;  %v132_v12 = vld [vmem:[%s2462_s2 + $0x330] sm:$0xff]  ;;  %v637_v59 = vld [vmem:[%s2463_s3 + $0xa0] sm:$0xff] }
  0x5f   :  { %v165_v10 = vld [vmem:[%s2462_s2 + $0x438] sm:$0xff]  ;;  %513 = vmatprep.subr.mxu1 %v137_v4  ;;  %568 = vmatprep.subr.mxu0 %v169_v5  ;;  %v164_v13 = vld [vmem:[%s2462_s2 + $0x430] sm:$0xff]  ;;  %v634_v62 = vld [vmem:[%s2463_s3 + $0x88] sm:$0xff] }
  0x60   :  { %514 = vmatpush2.msra.mxu1 %v136_v6  ;;  %569 = vmatpush1.msra.mxu0 %v168_v7  ;;  %v129_v14 = vld [vmem:[%s2462_s2 + $0x318] sm:$0xff]  ;;  %v128_v16 = vld [vmem:[%s2462_s2 + $0x310] sm:$0xff]  ;;  %v633_v63 = vld [vmem:[%s2463_s3 + $0x80] sm:$0xff] }
  0x61   :  { %v161_v15 = vld [vmem:[%s2462_s2 + $0x418] sm:$0xff]  ;;  %515 = vmatprep.subr.mxu1 %v133_v8  ;;  %570 = vmatprep.subr.mxu0 %v165_v10  ;;  %v160_v17 = vld [vmem:[%s2462_s2 + $0x410] sm:$0xff]  ;;  %v630_v3 = vld [vmem:[%s2463_s3 + $0x68] sm:$0xff] }
  0x62   :  { %516 = vmatpush2.msra.mxu1 %v132_v12  ;;  %571 = vmatpush1.msra.mxu0 %v164_v13  ;;  %v125_v18 = vld [vmem:[%s2462_s2 + $0x2f8] sm:$0xff]  ;;  %v124_v20 = vld [vmem:[%s2462_s2 + $0x2f0] sm:$0xff]  ;;  %v629_v4 = vld [vmem:[%s2463_s3 + $0x60] sm:$0xff] }
  0x63   :  { %v253_v19 = vld [vmem:[%s2462_s2 + $0x6f8] sm:$0x1]  ;;  %517 = vmatprep.subr.mxu1 %v129_v14  ;;  %572 = vmatprep.subr.mxu0 %v161_v15  ;;  %v252_v21 = vld [vmem:[%s2462_s2 + $0x6f0] sm:$0x1]  ;;  %v626_v7 = vld [vmem:[%s2463_s3 + $0x48] sm:$0xff] }
  0x64   :  { %518 = vmatpush2.msra.mxu1 %v128_v16  ;;  %573 = vmatpush1.msra.mxu0 %v160_v17  ;;  %v121_v22 = vld [vmem:[%s2462_s2 + $0x2d8] sm:$0xff]  ;;  %v120_v24 = vld [vmem:[%s2462_s2 + $0x2d0] sm:$0xff]  ;;  %v625_v8 = vld [vmem:[%s2463_s3 + $0x40] sm:$0xff] }
  0x65   :  { %v249_v23 = vld [vmem:[%s2462_s2 + $0x6d8] sm:$0xff]  ;;  %519 = vmatprep.subr.mxu1 %v125_v18  ;;  %1181 = vmatprep.subr.msk.mxu0 %vm316_vm0, %v253_v19  ;;  %v248_v25 = vld [vmem:[%s2462_s2 + $0x6d0] sm:$0xff]  ;;  %v622_v13 = vld [vmem:[%s2463_s3 + $0x28] sm:$0xff] }
  0x66   :  { %520 = vmatpush2.msra.mxu1 %v124_v20  ;;  %1182 = vmatpush2.msk.msra.mxu0 %vm316_vm0, %v252_v21  ;;  %v117_v26 = vld [vmem:[%s2462_s2 + $0x2b8] sm:$0xff]  ;;  %v116_v28 = vld [vmem:[%s2462_s2 + $0x2b0] sm:$0xff]  ;;  %v710_v16 = vld [vmem:[%s2463_s3 + $0x2e8] sm:$0xff] }
  0x67   :  { %v245_v27 = vld [vmem:[%s2462_s2 + $0x6b8] sm:$0xff]  ;;  %521 = vmatprep.subr.mxu1 %v121_v22  ;;  %592 = vmatprep.subr.mxu0 %v249_v23  ;;  %v244_v29 = vld [vmem:[%s2462_s2 + $0x6b0] sm:$0xff]  ;;  %v621_v17 = vld [vmem:[%s2463_s3 + $0x20] sm:$0xff] }
  0x68   :  { %522 = vmatpush2.msra.mxu1 %v120_v24  ;;  %593 = vmatpush2.msra.mxu0 %v248_v25  ;;  %v113_v30 = vld [vmem:[%s2462_s2 + $0x298] sm:$0xff]  ;;  %v112_v33 = vld [vmem:[%s2462_s2 + $0x290] sm:$0xff]  ;;  %v709_v18 = vld [vmem:[%s2463_s3 + $0x2e0] sm:$0xff] }
  0x69   :  { %v241_v31 = vld [vmem:[%s2462_s2 + $0x698] sm:$0xff]  ;;  %523 = vmatprep.subr.mxu1 %v117_v26  ;;  %594 = vmatprep.subr.mxu0 %v245_v27  ;;  %v240_v34 = vld [vmem:[%s2462_s2 + $0x690] sm:$0xff]  ;;  %v618_v23 = vld [vmem:[%s2463_s3 + $0x8] sm:$0xff] }
  0x6a   :  { %524 = vmatpush2.msra.mxu1 %v116_v28  ;;  %595 = vmatpush2.msra.mxu0 %v244_v29  ;;  %v109_v35 = vld [vmem:[%s2462_s2 + $0x278] sm:$0xff]  ;;  %v108_v37 = vld [vmem:[%s2462_s2 + $0x270] sm:$0xff]  ;;  %v706_v24 = vld [vmem:[%s2463_s3 + $0x2c8] sm:$0xff] }
  0x6b   :  { %v237_v36 = vld [vmem:[%s2462_s2 + $0x678] sm:$0xff]  ;;  %525 = vmatprep.subr.mxu1 %v113_v30  ;;  %596 = vmatprep.subr.mxu0 %v241_v31  ;;  %v236_v38 = vld [vmem:[%s2462_s2 + $0x670] sm:$0xff]  ;;  %v617_v25 = vld [vmem:[%s2463_s3] sm:$0xff] }
  0x6c   :  { %526 = vmatpush2.msra.mxu1 %v112_v33  ;;  %597 = vmatpush2.msra.mxu0 %v240_v34  ;;  %v105_v39 = vld [vmem:[%s2462_s2 + $0x258] sm:$0xff]  ;;  %v104_v42 = vld [vmem:[%s2462_s2 + $0x250] sm:$0xff]  ;;  %v705_v26 = vld [vmem:[%s2463_s3 + $0x2c0] sm:$0xff] }
  0x6d   :  { %v233_v40 = vld [vmem:[%s2462_s2 + $0x658] sm:$0xff]  ;;  %527 = vmatprep.subr.mxu1 %v109_v35  ;;  %598 = vmatprep.subr.mxu0 %v237_v36  ;;  %v232_v43 = vld [vmem:[%s2462_s2 + $0x650] sm:$0xff]  ;;  %v678_v31 = vld [vmem:[%s2463_s3 + $0x1e8] sm:$0xff] }
  0x6e   :  { %528 = vmatpush2.msra.mxu1 %v108_v37  ;;  %599 = vmatpush2.msra.mxu0 %v236_v38  ;;  %v101_v44 = vld [vmem:[%s2462_s2 + $0x238] sm:$0xff]  ;;  %v100_v46 = vld [vmem:[%s2462_s2 + $0x230] sm:$0xff]  ;;  %v702_v33 = vld [vmem:[%s2463_s3 + $0x2a8] sm:$0xff] }
  0x6f   :  { %v229_v45 = vld [vmem:[%s2462_s2 + $0x638] sm:$0xff]  ;;  %529 = vmatprep.subr.mxu1 %v105_v39  ;;  %600 = vmatprep.subr.mxu0 %v233_v40  ;;  %v228_v47 = vld [vmem:[%s2462_s2 + $0x630] sm:$0xff]  ;;  %v677_v34 = vld [vmem:[%s2463_s3 + $0x1e0] sm:$0xff] }
  0x70   :  { %530 = vmatpush2.msra.mxu1 %v104_v42  ;;  %601 = vmatpush2.msra.mxu0 %v232_v43  ;;  %v97_v48 = vld [vmem:[%s2462_s2 + $0x218] sm:$0xff]  ;;  %v96_v50 = vld [vmem:[%s2462_s2 + $0x210] sm:$0xff]  ;;  %v701_v35 = vld [vmem:[%s2463_s3 + $0x2a0] sm:$0xff] }
  0x71   :  { %v225_v49 = vld [vmem:[%s2462_s2 + $0x618] sm:$0xff]  ;;  %531 = vmatprep.subr.mxu1 %v101_v44  ;;  %602 = vmatprep.subr.mxu0 %v229_v45  ;;  %v224_v51 = vld [vmem:[%s2462_s2 + $0x610] sm:$0xff]  ;;  %v674_v40 = vld [vmem:[%s2463_s3 + $0x1c8] sm:$0xff] }
  0x72   :  { %532 = vmatpush2.msra.mxu1 %v100_v46  ;;  %603 = vmatpush2.msra.mxu0 %v228_v47  ;;  %v648_v52 = vld [vmem:[%s2463_s3 + $0xf8] sm:$0xff]  ;;  %v647_v53 = vld [vmem:[%s2463_s3 + $0xf0] sm:$0xff]  ;;  %v698_v42 = vld [vmem:[%s2463_s3 + $0x288] sm:$0xff] }
  0x73   :  { %533 = vmatprep.subr.mxu1 %v97_v48  ;;  %604 = vmatprep.subr.mxu0 %v225_v49  ;;  %v640_v56 = vld [vmem:[%s2463_s3 + $0xb8] sm:$0xff]  ;;  %v639_v57 = vld [vmem:[%s2463_s3 + $0xb0] sm:$0xff]  ;;  %v673_v43 = vld [vmem:[%s2463_s3 + $0x1c0] sm:$0xff] }
  0x74   :  { %534 = vmatpush2.msra.mxu1 %v96_v50  ;;  %535 = vmatprep.mubr.f32.mxu1 %v1714_v9  ;;  %v646_v9 = vld [vmem:[%s2463_s3 + $0xe8] sm:$0xff]  ;;  %v636_v60 = vld [vmem:[%s2463_s3 + $0x98] sm:$0xff]  ;;  %v635_v61 = vld [vmem:[%s2463_s3 + $0x90] sm:$0xff] }
  0x75   :  { %605 = vmatpush2.msra.mxu0 %v224_v51  ;;  %1183 = vmatprep.mubr.msk.f32.mxu0 %vm313_vm1, %v1613_v41  ;;  %v644_v41 = vld [vmem:[%s2463_s3 + $0xd8] sm:$0xff]  ;;  %v631_v2 = vld [vmem:[%s2463_s3 + $0x70] sm:$0xff]  ;;  %v697_v44 = vld [vmem:[%s2463_s3 + $0x280] sm:$0xff] }
  0x76   :  { %536 = vmatmul.mubr.f32.vlgmr.msra.gmra.mxu1 %v1686_v0  ;;  %607 = vmatmul.mubr.f32.vlgmr.msra.gmra.mxu0 %v1585_v32  ;;  %v643_v0 = vld [vmem:[%s2463_s3 + $0xd0] sm:$0xff]  ;;  %v642_v32 = vld [vmem:[%s2463_s3 + $0xc8] sm:$0xff]  ;;  %v632_v1 = vld [vmem:[%s2463_s3 + $0x78] sm:$0xff] }
  0x77   :  { %737 = vmatprep.subr.mxu0 %v648_v52  ;;  %v628_v5 = vld [vmem:[%s2463_s3 + $0x58] sm:$0xff]  ;;  %v627_v6 = vld [vmem:[%s2463_s3 + $0x50] sm:$0xff]  ;;  %v670_v49 = vld [vmem:[%s2463_s3 + $0x1a8] sm:$0xff] }
  0x78   :  { %738 = vmatpush1.msra.mxu0 %v647_v53  ;;  %v624_v10 = vld [vmem:[%s2463_s3 + $0x38] sm:$0xff]  ;;  %v623_v12 = vld [vmem:[%s2463_s3 + $0x30] sm:$0xff]  ;;  %v694_v50 = vld [vmem:[%s2463_s3 + $0x268] sm:$0xff] }
  0x79   :  { %739 = vmatprep.subr.mxu0 %v646_v9  ;;  %v712_v14 = vld [vmem:[%s2463_s3 + $0x2f8] sm:$0xff]  ;;  %v711_v15 = vld [vmem:[%s2463_s3 + $0x2f0] sm:$0xff]  ;;  %v669_v51 = vld [vmem:[%s2463_s3 + $0x1a0] sm:$0xff] }
  0x7a   :  { %740 = vmatpush1.msra.mxu0 %v645_v54  ;;  %808 = vmatprep.subr.mxu1 %v712_v14  ;;  %v620_v19 = vld [vmem:[%s2463_s3 + $0x18] sm:$0xff]  ;;  %v619_v21 = vld [vmem:[%s2463_s3 + $0x10] sm:$0xff]  ;;  %v693_v52 = vld [vmem:[%s2463_s3 + $0x260] sm:$0xff] }
  0x7b   :  { %741 = vmatprep.subr.mxu0 %v644_v41  ;;  %809 = vmatpush1.msra.mxu1 %v711_v15  ;;  %v708_v20 = vld [vmem:[%s2463_s3 + $0x2d8] sm:$0xff]  ;;  %v707_v22 = vld [vmem:[%s2463_s3 + $0x2d0] sm:$0xff]  ;;  %v686_v14 = vld [vmem:[%s2463_s3 + $0x228] sm:$0xff] }
  0x7c   :  { %742 = vmatpush1.msra.mxu0 %v643_v0  ;;  %810 = vmatprep.subr.mxu1 %v710_v16  ;;  %v680_v27 = vld [vmem:[%s2463_s3 + $0x1f8] sm:$0xff]  ;;  %v679_v29 = vld [vmem:[%s2463_s3 + $0x1f0] sm:$0xff]  ;;  %v666_v0 = vld [vmem:[%s2463_s3 + $0x188] sm:$0xff] }
  0x7d   :  { %743 = vmatprep.subr.mxu0 %v642_v32  ;;  %811 = vmatpush1.msra.mxu1 %v709_v18  ;;  %v704_v28 = vld [vmem:[%s2463_s3 + $0x2b8] sm:$0xff]  ;;  %v703_v30 = vld [vmem:[%s2463_s3 + $0x2b0] sm:$0xff]  ;;  %v690_v32 = vld [vmem:[%s2463_s3 + $0x248] sm:$0xff] }
  0x7e   :  { %744 = vmatpush1.msra.mxu0 %v641_v55  ;;  %812 = vmatprep.subr.mxu1 %v708_v20  ;;  %v676_v36 = vld [vmem:[%s2463_s3 + $0x1d8] sm:$0xff]  ;;  %v675_v38 = vld [vmem:[%s2463_s3 + $0x1d0] sm:$0xff]  ;;  %v665_v55 = vld [vmem:[%s2463_s3 + $0x180] sm:$0xff] }
  0x7f   :  { %745 = vmatprep.subr.mxu0 %v640_v56  ;;  %813 = vmatpush1.msra.mxu1 %v707_v22  ;;  %v700_v37 = vld [vmem:[%s2463_s3 + $0x298] sm:$0xff]  ;;  %v699_v39 = vld [vmem:[%s2463_s3 + $0x290] sm:$0xff]  ;;  %v689_v56 = vld [vmem:[%s2463_s3 + $0x240] sm:$0xff]  ;;  %v258_v22 = vsub.s32 0, %v1523_v11 }
  0x80   :  { %746 = vmatpush1.msra.mxu0 %v639_v57  ;;  %814 = vmatprep.subr.mxu1 %v706_v24  ;;  %v672_v45 = vld [vmem:[%s2463_s3 + $0x1b8] sm:$0xff]  ;;  %v671_v47 = vld [vmem:[%s2463_s3 + $0x1b0] sm:$0xff]  ;;  %v685_v15 = vld [vmem:[%s2463_s3 + $0x220] sm:$0xff]  ;;  %v262_v24 = vsub.s32 4, %v1523_v11 }
  0x81   :  { %747 = vmatprep.subr.mxu0 %v638_v58  ;;  %815 = vmatpush1.msra.mxu1 %v705_v26  ;;  %v696_v46 = vld [vmem:[%s2463_s3 + $0x278] sm:$0xff]  ;;  %v695_v48 = vld [vmem:[%s2463_s3 + $0x270] sm:$0xff]  ;;  %v682_v18 = vld [vmem:[%s2463_s3 + $0x208] sm:$0xff] }
  0x82   :  { %748 = vmatpush1.msra.mxu0 %v637_v59  ;;  %816 = vmatprep.subr.mxu1 %v704_v28  ;;  %v668_v53 = vld [vmem:[%s2463_s3 + $0x198] sm:$0xff]  ;;  %v667_v54 = vld [vmem:[%s2463_s3 + $0x190] sm:$0xff]  ;;  %v662_v59 = vld [vmem:[%s2463_s3 + $0x168] sm:$0xff] }
  0x83   :  { %749 = vmatprep.subr.mxu0 %v636_v60  ;;  %817 = vmatpush1.msra.mxu1 %v703_v30  ;;  %v692_v9 = vld [vmem:[%s2463_s3 + $0x258] sm:$0xff]  ;;  %v691_v41 = vld [vmem:[%s2463_s3 + $0x250] sm:$0xff]  ;;  %v661_v60 = vld [vmem:[%s2463_s3 + $0x160] sm:$0xff] }
  0x84   :  { %750 = vmatpush1.msra.mxu0 %v635_v61  ;;  %818 = vmatprep.subr.mxu1 %v702_v33  ;;  %v664_v57 = vld [vmem:[%s2463_s3 + $0x178] sm:$0xff]  ;;  %v663_v58 = vld [vmem:[%s2463_s3 + $0x170] sm:$0xff]  ;;  %v714_v20 = vld [vmem:[%s2463_s3 + $0x308] sm:$0xff] }
  0x85   :  { %751 = vmatprep.subr.mxu0 %v634_v62  ;;  %819 = vmatpush1.msra.mxu1 %v701_v35  ;;  %v660_v61 = vld [vmem:[%s2463_s3 + $0x158] sm:$0xff]  ;;  %v659_v62 = vld [vmem:[%s2463_s3 + $0x150] sm:$0xff] }
  0x86   :  { %752 = vmatpush1.msra.mxu0 %v633_v63  ;;  %820 = vmatprep.subr.mxu1 %v700_v37  ;;  %v658_v63 = vld [vmem:[%s2463_s3 + $0x148] sm:$0xff]  ;;  %v684_v16 = vld [vmem:[%s2463_s3 + $0x218] sm:$0xff] }
  0x87   :  { %753 = vmatprep.subr.mxu0 %v632_v1  ;;  %821 = vmatpush1.msra.mxu1 %v699_v39  ;;  %v657_v1 = vld [vmem:[%s2463_s3 + $0x140] sm:$0xff] }
  0x88   :  { %754 = vmatpush1.msra.mxu0 %v631_v2  ;;  %822 = vmatprep.subr.mxu1 %v698_v42  ;;  %v656_v2 = vld [vmem:[%s2463_s3 + $0x138] sm:$0xff] }
  0x89   :  { %755 = vmatprep.subr.mxu0 %v630_v3  ;;  %823 = vmatpush1.msra.mxu1 %v697_v44  ;;  %v655_v3 = vld [vmem:[%s2463_s3 + $0x130] sm:$0xff] }
  0x8a   :  { %756 = vmatpush1.msra.mxu0 %v629_v4  ;;  %824 = vmatprep.subr.mxu1 %v696_v46  ;;  %v654_v4 = vld [vmem:[%s2463_s3 + $0x128] sm:$0xff] }
  0x8b   :  { %757 = vmatprep.subr.mxu0 %v628_v5  ;;  %825 = vmatpush1.msra.mxu1 %v695_v48  ;;  %v653_v5 = vld [vmem:[%s2463_s3 + $0x120] sm:$0xff] }
  0x8c   :  { %758 = vmatpush1.msra.mxu0 %v627_v6  ;;  %826 = vmatprep.subr.mxu1 %v694_v50  ;;  %v652_v6 = vld [vmem:[%s2463_s3 + $0x118] sm:$0xff] }
  0x8d   :  { %759 = vmatprep.subr.mxu0 %v626_v7  ;;  %827 = vmatpush1.msra.mxu1 %v693_v52  ;;  %v651_v7 = vld [vmem:[%s2463_s3 + $0x110] sm:$0xff] }
  0x8e   :  { %760 = vmatpush1.msra.mxu0 %v625_v8  ;;  %828 = vmatprep.subr.mxu1 %v692_v9  ;;  %v650_v8 = vld [vmem:[%s2463_s3 + $0x108] sm:$0xff] }
  0x8f   :  { %761 = vmatprep.subr.mxu0 %v624_v10  ;;  %829 = vmatpush1.msra.mxu1 %v691_v41  ;;  %v649_v10 = vld [vmem:[%s2463_s3 + $0x100] sm:$0xff]  ;;  %v899_v41 = vld [vmem:[%s2464_s4 + $0x90] sm:$0xf] }
  0x90   :  { %762 = vmatpush1.msra.mxu0 %v623_v12  ;;  %830 = vmatprep.subr.mxu1 %v690_v32  ;;  %v688_v12 = vld [vmem:[%s2463_s3 + $0x238] sm:$0xff]  ;;  %v900_v32 = vld [vmem:[%s2461_s1] sm:$0x3] }
  0x91   :  { %763 = vmatprep.subr.mxu0 %v622_v13  ;;  %831 = vmatpush1.msra.mxu1 %v689_v56  ;;  %v687_v13 = vld [vmem:[%s2463_s3 + $0x230] sm:$0xff] }
  0x92   :  { %764 = vmatpush1.msra.mxu0 %v621_v17  ;;  %832 = vmatprep.subr.mxu1 %v688_v12  ;;  %v683_v17 = vld [vmem:[%s2463_s3 + $0x210] sm:$0xff]  ;;  %v1068_v12 = vld [vmem:[%s2465_s5 + $0x48] sm:$0x3] }
  0x93   :  { %765 = vmatprep.subr.mxu0 %v620_v19  ;;  %833 = vmatpush1.msra.mxu1 %v687_v13  ;;  %v681_v19 = vld [vmem:[%s2463_s3 + $0x200] sm:$0xff]  ;;  %v895_v56 = vld [vmem:[%s2464_s4 + $0x70] sm:$0xff] }
  0x94   :  { %766 = vmatpush1.msra.mxu0 %v619_v21  ;;  %834 = vmatprep.subr.mxu1 %v686_v14  ;;  %v713_v21 = vld [vmem:[%s2463_s3 + $0x300] sm:$0xff]  ;;  %v1066_v14 = vld [vmem:[%s2465_s5 + $0x38] sm:$0xff] }
  0x95   :  { %767 = vmatprep.subr.mxu0 %v618_v23  ;;  %835 = vmatpush1.msra.mxu1 %v685_v15  ;;  %v2317_v23 = vld [vmem:[%s2466_s6] sm:$0xff]  ;;  %v1065_v15 = vld [vmem:[%s2465_s5 + $0x30] sm:$0xff] }
  0x96   :  { %768 = vmatpush1.msra.mxu0 %v617_v25  ;;  %836 = vmatprep.subr.mxu1 %v684_v16  ;;  %v259_v25 = vrot.slane %v2317_v23, %v258_v22  ;;  %v263_v26 = vrot.slane %v2317_v23, %v262_v24  ;;  %v1067_v13 = vld [vmem:[%s2465_s5 + $0x40] sm:$0xff]  ;;  %v1064_v16 = vld [vmem:[%s2465_s5 + $0x28] sm:$0xff] }
  0x97   :  { %769 = vmatprep.subr.mxu0 %v680_v27  ;;  %837 = vmatpush1.msra.mxu1 %v683_v17  ;;  %v1063_v17 = vld [vmem:[%s2465_s5 + $0x20] sm:$0xff] }
  0x98   :  { %770 = vmatpush2.msra.mxu0 %v679_v29  ;;  %838 = vmatprep.subr.mxu1 %v682_v18  ;;  %v279_v27 = vrot.slane %v259_v25, %v258_v22  ;;  %v283_v28 = vrot.slane %v263_v26, %v258_v22  ;;  %v717_v18 = vsub.s32 1, %v1523_v11 }
  0x99   :  { %771 = vmatprep.subr.mxu0 %v678_v31  ;;  %839 = vmatpush1.msra.mxu1 %v681_v19  ;;  %v721_v19 = vsub.s32 5, %v1523_v11 }
  0x9a   :  { %772 = vmatpush2.msra.mxu0 %v677_v34  ;;  %870 = vmatprep.subr.mxu1 %v714_v20  ;;  %v718_v20 = vrot.slane %v2317_v23, %v717_v18 }
  0x9b   :  { %773 = vmatprep.subr.mxu0 %v676_v36  ;;  %871 = vmatpush2.msra.mxu1 %v713_v21  ;;  %v722_v21 = vrot.slane %v2317_v23, %v721_v19 }
  0x9c   :  { %774 = vmatpush2.msra.mxu0 %v675_v38 }
  0x9d   :  { %775 = vmatprep.subr.mxu0 %v674_v40  ;;  %v28_v40 = vld [vmem:[%s2466_s6 + $0x8] sm:$0xff]  ;;  %v732_v25 = vrot.slane %v722_v21, %v717_v18 }
  0x9e   :  { %776 = vmatpush2.msra.mxu0 %v673_v43  ;;  %v267_v42 = vrot.slane %v28_v40, %v258_v22  ;;  %v271_v43 = vrot.slane %v28_v40, %v262_v24  ;;  %v728_v24 = vrot.slane %v718_v20, %v717_v18  ;;  %v1060_v40 = vld [vmem:[%s2465_s5 + $0x8] sm:$0xff] }
  0x9f   :  { %777 = vmatprep.subr.mxu0 %v672_v45 }
  0xa0   :  { %778 = vmatpush2.msra.mxu0 %v671_v47  ;;  %v287_v44 = vrot.slane %v267_v42, %v258_v22  ;;  %v291_v45 = vrot.slane %v271_v43, %v258_v22  ;;  %v1059_v42 = vld [vmem:[%s2465_s5] sm:$0xff]  ;;  %v1055_v43 = vsub.s32 2, %v1523_v11 }
  0xa1   :  { %779 = vmatprep.subr.mxu0 %v670_v49 }
  0xa2   :  { %780 = vmatpush2.msra.mxu0 %v669_v51 }
  0xa3   :  { %781 = vmatprep.subr.mxu0 %v668_v53 }
  0xa4   :  { %782 = vmatpush2.msra.mxu0 %v667_v54 }
  0xa5   :  { %783 = vmatprep.subr.mxu0 %v666_v0  ;;  %v1263_v0 = vmov 0.0  }
  0xa6   :  { %784 = vmatpush2.msra.mxu0 %v665_v55  ;;  %1203 = vmatprep.subr.mxu1 %v1263_v0  ;;  %v896_v55 = vld [vmem:[%s2464_s4 + $0x78] sm:$0xff] }
  0xa7   :  { %785 = vmatprep.subr.mxu0 %v664_v57  ;;  %v894_v57 = vld [vmem:[%s2464_s4 + $0x68] sm:$0xff] }
  0xa8   :  { %786 = vmatpush2.msra.mxu0 %v663_v58  ;;  %v893_v58 = vld [vmem:[%s2464_s4 + $0x60] sm:$0xff] }
  0xa9   :  { %787 = vmatprep.subr.mxu0 %v662_v59  ;;  %v892_v59 = vld [vmem:[%s2464_s4 + $0x58] sm:$0xff] }
  0xaa   :  { %788 = vmatpush2.msra.mxu0 %v661_v60  ;;  %v891_v60 = vld [vmem:[%s2464_s4 + $0x50] sm:$0xff] }
  0xab   :  { %789 = vmatprep.subr.mxu0 %v660_v61  ;;  %v890_v61 = vld [vmem:[%s2464_s4 + $0x48] sm:$0xff] }
  0xac   :  { %790 = vmatpush2.msra.mxu0 %v659_v62  ;;  %v889_v62 = vld [vmem:[%s2464_s4 + $0x40] sm:$0xff] }
  0xad   :  { %791 = vmatprep.subr.mxu0 %v658_v63  ;;  %v888_v63 = vld [vmem:[%s2464_s4 + $0x38] sm:$0xff] }
  0xae   :  { %792 = vmatpush2.msra.mxu0 %v657_v1  ;;  %v887_v1 = vld [vmem:[%s2464_s4 + $0x30] sm:$0xff] }
  0xaf   :  { %793 = vmatprep.subr.mxu0 %v656_v2  ;;  %v886_v2 = vld [vmem:[%s2464_s4 + $0x28] sm:$0xff] }
  0xb0   :  { %794 = vmatpush2.msra.mxu0 %v655_v3  ;;  %v885_v3 = vld [vmem:[%s2464_s4 + $0x20] sm:$0xff] }
  0xb1   :  { %795 = vmatprep.subr.mxu0 %v654_v4  ;;  %v884_v4 = vld [vmem:[%s2464_s4 + $0x18] sm:$0xff] }
  0xb2   :  { %796 = vmatpush2.msra.mxu0 %v653_v5  ;;  %v883_v5 = vld [vmem:[%s2464_s4 + $0x10] sm:$0xff] }
  0xb3   :  { %797 = vmatprep.subr.mxu0 %v652_v6  ;;  %v882_v6 = vld [vmem:[%s2464_s4 + $0x8] sm:$0xff] }
  0xb4   :  { %798 = vmatpush2.msra.mxu0 %v651_v7  ;;  %v881_v7 = vld [vmem:[%s2464_s4] sm:$0xff] }
  0xb5   :  { %799 = vmatprep.subr.mxu0 %v650_v8  ;;  %v898_v8 = vld [vmem:[%s2464_s4 + $0x88] sm:$0xff] }
  0xb6   :  { %800 = vmatpush2.msra.mxu0 %v649_v10  ;;  %v897_v10 = vld [vmem:[%s2464_s4 + $0x80] sm:$0xff] }
  0xb7   :  { %1208 = vmatprep.subr.mxu0 %v1263_v0 }
  0xf3   :  { %v466_v29 = vpop.f32.mrf.mxu1 }
  0xf5   :  { %v468_v35 = vpop.f32.mrf.mxu1 }
 0x104   :  { %v395_v30 = vpop.f32.mrf.mxu0 }
 0x105   :  { %v396_v31 = vadd.f32 %v395_v30, %v279_v27 }
 0x106   :  { %v397_v33 = vpop.f32.mrf.mxu0 }
 0x107   :  { %v398_v34 = vadd.f32 %v397_v33, %v283_v28  ;;  %v467_v36 = vadd.f32 %v466_v29, %v396_v31 }
 0x109   :  { %v469_v37 = vadd.f32 %v468_v35, %v398_v34  ;;  %v613_v39 = vmax.f32 %v467_v36, 0.0 }
 0x10b   :  { %v614_v38 = vmax.f32 %v469_v37, 0.0 }
 0x10d   :  { %801 = vmatprep.mubr.f32.mxu0 %v614_v38  ;;  %v1062_v38 = vld [vmem:[%s2465_s5 + $0x18] sm:$0xff] }
 0x10e   :  { %802 = vmatmul.mubr.f32.vlgmr.msra.gmra.mxu0 %v613_v39  ;;  %v1061_v39 = vld [vmem:[%s2465_s5 + $0x10] sm:$0xff]  ;;  %s1265_s5 = smov [#allocation2]  }
 0x10f   :  { %1228 = vmatprep.mubr.msk.f32.mxu0 %vm1264_vm4, %v1263_v0  ;;  %1209 = vmatpush3.msk.msra.mxu0 %vm1077_vm6, %v1068_v12  ;;  %s1170_s25 = sshll.u32 %s1265_s5, 4  ;;  %s1171_s25 = int_to_ptr.vmem [resolvable:$true] %s1170_s25 }
 0x110   :  { %1210 = vmatprep.subr.mxu0 %v1263_v0  ;;  %s1240_s26 = scalar_lea.vmem %s1171_s25, 32  ;;  %p1245_p1 = scmp.lt.s32.totalorder %s1171_s25, %s1171_s25 }
 0x111   :  { %1211 = vmatpush3.msra.mxu0 %v1067_v13  ;;  %p1241_p0 = scmp.ne.s32.totalorder %s1171_s25, %s1240_s26  ;;  %p1246_p2 = scmp.lt.s32.totalorder %s1240_s26, %s1240_s26 }
 0x112   :  { %1212 = vmatprep.subr.mxu0 %v1263_v0 }
 0x113   :  { %1213 = vmatpush3.msra.mxu0 %v1066_v14  ;;  %p1247_p3 = por %p1246_p2, %p1245_p1 }
 0x114   :  { %1214 = vmatprep.subr.mxu0 %v1263_v0 }
 0x115   :  { %1215 = vmatpush3.msra.mxu0 %v1065_v15  ;;  %p1248_p4 = pnand %p1247_p3, %p1241_p0 }
 0x116   :  { %1216 = vmatprep.subr.mxu0 %v1263_v0 }
 0x117   :  { %1217 = vmatpush3.msra.mxu0 %v1064_v16 }
 0x118   :  { %1218 = vmatprep.subr.mxu0 %v1263_v0 }
 0x119   :  { %1219 = vmatpush3.msra.mxu0 %v1063_v17 }
 0x11a   :  { %1220 = vmatprep.subr.mxu0 %v1263_v0 }
 0x11b   :  { %1221 = vmatpush3.msra.mxu0 %v1062_v38 }
 0x11c   :  { %1222 = vmatprep.subr.mxu0 %v1263_v0 }
 0x11d   :  { %1223 = vmatpush3.msra.mxu0 %v1061_v39 }
 0x11e   :  { %1224 = vmatprep.subr.mxu0 %v1263_v0 }
 0x11f   :  { %1225 = vmatpush3.msra.mxu0 %v1060_v40 }
 0x120   :  { %1226 = vmatprep.subr.mxu0 %v1263_v0 }
 0x121   :  { %1227 = vmatpush3.msra.mxu0 %v1059_v42 }
 0x136   :  { %v537_v46 = vpop.f32.mrf.mxu1  ;;  %v608_v47 = vpop.f32.mrf.mxu0 }
 0x137   :  { %v538_v48 = vadd.f32 %v537_v46, %v287_v44  ;;  %v1056_v44 = vrot.slane %v2317_v23, %v1055_v43 }
 0x138   :  { %v539_v49 = vpop.f32.mrf.mxu1  ;;  %v610_v52 = vpop.f32.mrf.mxu0 }
 0x139   :  { %v540_v50 = vadd.f32 %v539_v49, %v291_v45  ;;  %v609_v51 = vadd.f32 %v608_v47, %v538_v48 }
 0x13b   :  { %v611_v53 = vadd.f32 %v610_v52, %v540_v50  ;;  %v615_v54 = vmax.f32 %v609_v51, 0.0  ;;  %v1071_v50 = vsub.s32 3, %v1523_v11 }
 0x13d   :  { %v616_v9 = vmax.f32 %v611_v53, 0.0  ;;  %v1072_v51 = vrot.slane %v2317_v23, %v1071_v50 }
 0x13f   :  { %1184 = vmatprep.mubr.msk.f32.mxu1 %vm733_vm2, %v616_v9 }
 0x140   :  { %873 = vmatmul.mubr.f32.vlgmr.msra.gmra.mxu1 %v615_v54 }
 0x141   :  { %1205 = vmatprep.mubr.msk.f32.mxu1 %vm1264_vm4, %v1263_v0  ;;  %1204 = vmatpush3.msk.msra.mxu1 %vm905_vm3, %v899_v41 }
 0x142   :  { %983 = vmatprep.subr.mxu1 %v1263_v0 }
 0x144   :  { %1206 = vmatmul.mubr.msk.f32.vlgmr.msra.gmra.mxu1 %vm901_vm5, %v900_v32 }
 0x145   :  { %984 = vmatpush1.msra.mxu1 %v896_v55 }
 0x146   :  { %985 = vmatprep.subr.mxu1 %v1263_v0 }
 0x147   :  { %986 = vmatpush1.msra.mxu1 %v895_v56 }
 0x148   :  { %987 = vmatprep.subr.mxu1 %v1263_v0 }
 0x149   :  { %988 = vmatpush1.msra.mxu1 %v894_v57 }
 0x14a   :  { %989 = vmatprep.subr.mxu1 %v1263_v0 }
 0x14b   :  { %990 = vmatpush1.msra.mxu1 %v893_v58 }
 0x14c   :  { %991 = vmatprep.subr.mxu1 %v1263_v0 }
 0x14d   :  { %992 = vmatpush1.msra.mxu1 %v892_v59 }
 0x14e   :  { %993 = vmatprep.subr.mxu1 %v1263_v0 }
 0x14f   :  { %994 = vmatpush1.msra.mxu1 %v891_v60 }
 0x150   :  { %995 = vmatprep.subr.mxu1 %v1263_v0 }
 0x151   :  { %996 = vmatpush1.msra.mxu1 %v890_v61 }
 0x152   :  { %997 = vmatprep.subr.mxu1 %v1263_v0 }
 0x153   :  { %998 = vmatpush1.msra.mxu1 %v889_v62 }
 0x154   :  { %999 = vmatprep.subr.mxu1 %v1263_v0 }
 0x155   :  { %1000 = vmatpush1.msra.mxu1 %v888_v63 }
 0x156   :  { %1001 = vmatprep.subr.mxu1 %v1263_v0 }
 0x157   :  { %1002 = vmatpush1.msra.mxu1 %v887_v1 }
 0x158   :  { %1003 = vmatprep.subr.mxu1 %v1263_v0 }
 0x159   :  { %1004 = vmatpush1.msra.mxu1 %v886_v2 }
 0x15a   :  { %1005 = vmatprep.subr.mxu1 %v1263_v0 }
 0x15b   :  { %1006 = vmatpush1.msra.mxu1 %v885_v3 }
 0x15c   :  { %1007 = vmatprep.subr.mxu1 %v1263_v0 }
 0x15d   :  { %1008 = vmatpush1.msra.mxu1 %v884_v4 }
 0x15e   :  { %1009 = vmatprep.subr.mxu1 %v1263_v0 }
 0x15f   :  { %1010 = vmatpush1.msra.mxu1 %v883_v5 }
 0x160   :  { %1011 = vmatprep.subr.mxu1 %v1263_v0 }
 0x161   :  { %1012 = vmatpush1.msra.mxu1 %v882_v6 }
 0x162   :  { %1013 = vmatprep.subr.mxu1 %v1263_v0 }
 0x163   :  { %1014 = vmatpush1.msra.mxu1 %v881_v7 }
 0x164   :  { %1043 = vmatprep.subr.mxu1 %v1263_v0 }
 0x165   :  { %1044 = vmatpush2.msra.mxu1 %v898_v8 }
 0x166   :  { %1045 = vmatprep.subr.mxu1 %v1263_v0 }
 0x167   :  { %1046 = vmatpush2.msra.mxu1 %v897_v10 }
 0x1ce   :  { %v803_v22 = vpop.f32.mrf.mxu0 }
 0x1cf   :  { %v804_v27 = vadd.f32 %v803_v22, %v728_v24 }
 0x1d0   :  { %v805_v26 = vpop.f32.mrf.mxu0 }
 0x1d1   :  { %v806_v29 = vadd.f32 %v805_v26, %v732_v25 }
 0x200   :  { %v874_v28 = vpop.f32.mrf.mxu1 }
 0x201   :  { %v875_v30 = vadd.f32 %v874_v28, %v804_v27 }
 0x202   :  { %v876_v31 = vpop.f32.mrf.mxu1 }
 0x203   :  { %v877_v33 = vadd.f32 %v876_v31, %v806_v29  ;;  %v879_v35 = vmax.f32 %v875_v30, 0.0 }
 0x204   :  { %v975_v36 = vpop.f32.mrf.mxu1 }
 0x205   :  { %v880_v34 = vmax.f32 %v877_v33, 0.0 }
 0x206   :  { %v1207_v37 = vpop.f32.mrf.mxu1 }
 0x207   :  { %1187 = vmatprep.mubr.msk.f32.mxu1 %vm979_vm7, %v880_v34 }
 0x208   :  { %1048 = vmatmul.mubr.f32.vlgmr.msra.gmra.mxu1 %v879_v35 }
 0x2c8   :  { %v1049_v45 = vpop.f32.mrf.mxu1 }
 0x2c9   :  { %v1050_v46 = vadd.f32 %v1049_v45, %v975_v36 }
 0x2ca   :  { %v1051_v47 = vpop.f32.mrf.mxu1 }
 0x2cb   :  { %v1057_v48 = vadd.f32 %v1056_v44, %v1050_v46 }
 0x2cd   :  { %v1058_v49 = vmax.f32 %v1057_v48, 0.0 }
 0x2cf   :  { %1229 = vmatmul.mubr.msk.f32.vlgmr.msra.gmra.mxu0 %vm1073_vm8, %v1058_v49 }
 0x38f   :  { %v1147_v52 = vpop.f32.mrf.mxu0 }
 0x390   :  { %v1148_v53 = vadd.f32 %v1147_v52, %v1072_v51 }
 0x391   :  { %v1230_v9 = vpop.f32.mrf.mxu0 }
 0x392   :  { %v1152_v54 = vsel %vm1151_vm9, %v1148_v53, -inf }
 0x393   :  { %1153 = vmax.xlane.f32.xlu0 %v1152_v54 }
 0x41c   :  { %v1154_v41 = vpop.xlane.xlu0 %1153 }
 0x41d   :  { %v1155_v0 = vsub.f32 %v1148_v53, %v1154_v41 }
 0x41f   :  { %v1156_v32 = vmul.f32 1.442695, %v1155_v0 }
 0x421   :  { %1236 = vpow2.f32 %v1156_v32 }
 0x42e   :  { %v1237_v55 = vpop.eup %1236 }
 0x42f   :  { %v1158_v56 = vsel %vm1151_vm9, %v1237_v55, 0.0 }
 0x430   :  { %1159 = vadd.xlane.f32.xlu0 %v1158_v56 }
 0x4b9   :  { %v1160_v57 = vpop.xlane.xlu0 %1159 }
 0x4ba   :  { %1238 = vrcp.f32 %v1160_v57 }
 0x4c7   :  { %v1239_v11 = vpop.eup %1238 }
 0x4c8   :  { %v1162_v23 = vmul.f32 %v1239_v11, %v1237_v55 }
 0x4ca   :  { %1163 = vst.msk [vmem:[#allocation2] sm:$0x3] %vm1151_vm9, %v1162_v23 }
 0x4cb   :  { %1251 = shalt.err (!%p1248_p4)
}
 0x4cc   :  { %1173 = dma.vmem_to_hbm [thread:$0]  %s1171_s25, 32, %s2467_s7, [#allocation3]  }
 0x4cd   :  { %1260 = dma.done.wait [#allocation3], 32  }
 0x4ce   :  { %1261 = vsyncadd [#allocation3], 4294967264 }
 0x4cf   :  { %1177 = vsyncpa [#allocation3], 1 }

</bundles_post_ra>
